<compile_context>
chip_gen: v6e
topology: v6e:2x2x1
jax: 0.10.0
libtpu: 0.0.40
codegen_flags: <defaults>
</compile_context>

<pallas_src>
import functools

import jax
import jax.numpy as jnp
from jax.experimental import pallas as pl
from jax.experimental.pallas import tpu as pltpu

LN_EPS = 1e-5  # PyTorch nn.LayerNorm default


def _build_im2col(pad_ref, col_ref, *, H, W, C, padl):
    """Fill col_ref (9*C, H*W) with the 9 shifted, zero-masked copies of the image.

    pad_ref is (C, H*W + 2*padl) and holds the image at lane offset `padl`.  The halo
    lanes are only ever read under a mask, so they need no zeroing at all.
    Row ordering matches conv weights flattened as (Cout, kh, kw, Cin) -> (Cout, 9*Cin).
    """
    HW = H * W
    pos = jax.lax.broadcasted_iota(jnp.int32, (C, HW), 1)
    if (W & (W - 1)) == 0:                          # power-of-two fast path (bit ops)
        xi = pos & (W - 1)
        yi = pos >> (W.bit_length() - 1)
    else:
        yi = pos // W
        xi = pos - yi * W
    for dy in (-1, 0, 1):
        for dx in (-1, 0, 1):
            t = (dy + 1) * 3 + (dx + 1)             # tap index == kh*3 + kw
            s = dy * W + dx                         # flat spatial shift
            shifted = pad_ref[:, pl.ds(padl + s, HW)]          # (C, HW) static slice
            mask = ((xi + dx >= 0) & (xi + dx < W) &
                    (yi + dy >= 0) & (yi + dy < H))
            col_ref[pl.ds(t * C, C), :] = jnp.where(mask, shifted, 0.0)


def block_kernel(x_ref, g_ref, beta_ref, w1_ref, b1_ref, w2_ref, b2_ref, o_ref,
                 pad1_ref, col1_ref, pad2_ref, col2_ref, *, H, W, padl):
    HW = H * W
    Cin = g_ref.shape[0]
    Cout = w1_ref.shape[0]

    x = x_ref[0].astype(jnp.float32)                           # (Cin, HW), lane-dense

    # ---- LayerNorm over all non-batch dims (== torch nn.LayerNorm((C, H, W))) ----
    mean = jnp.mean(x)
    var = jnp.mean(jnp.square(x - mean))
    normed = (x - mean) * jax.lax.rsqrt(var + LN_EPS)
    normed = normed * g_ref[...] + beta_ref[...]

    # ---- conv1: 3x3 / stride 1 / pad 1 as ONE im2col matmul, + bias, + SiLU ----
    pad1_ref[:, pl.ds(padl, HW)] = normed                      # aligned lane-dense store
    _build_im2col(pad1_ref, col1_ref, H=H, W=W, C=Cin, padl=padl)
    a1 = jnp.dot(w1_ref[...], col1_ref[...], preferred_element_type=jnp.float32)
    a1 = a1 + b1_ref[...]                                      # (Cout, HW) + (Cout, 1)
    h1 = a1 * jax.nn.sigmoid(a1)                               # SiLU

    # ---- conv2: 3x3 / stride 1 / pad 1 as ONE im2col matmul, + bias, + SiLU ----
    pad2_ref[:, pl.ds(padl, HW)] = h1
    _build_im2col(pad2_ref, col2_ref, H=H, W=W, C=Cout, padl=padl)
    a2 = jnp.dot(w2_ref[...], col2_ref[...], preferred_element_type=jnp.float32)
    a2 = a2 + b2_ref[...]
    h2 = a2 * jax.nn.sigmoid(a2)

    o_ref[0] = h2.astype(o_ref.dtype)                          # (Cout, HW), lane-dense


def block_forward(x_nchw, gamma_chw, beta_chw, w1_oihw, b1, w2_oihw, b2):
    """Block forward: LayerNorm -> conv3x3 -> SiLU -> conv3x3 -> SiLU.

    x_nchw: (N, Cin, H, W) float32 (PyTorch layout).  Returns (N, Cout, H, W).
    Conv weights are PyTorch OIHW; LayerNorm affine params are (C, H, W).
    """
    N, Cin, H, W = x_nchw.shape
    Cout = w1_oihw.shape[0]
    HW = H * W
    PADL = 128                                   # halo room; needs W + 1 <= PADL
    assert W + 1 <= PADL

    # Free reshapes only (no HBM transposes): spatial axis flattened onto lanes.
    x_flat = x_nchw.reshape(N, Cin, HW)
    gamma = gamma_chw.reshape(Cin, HW)
    beta = beta_chw.reshape(Cin, HW)
    # (Cout, Cin, kh, kw) -> (Cout, kh, kw, Cin) -> (Cout, 9*Cin); k = (kh*3+kw)*Cin+ci
    w1_mat = jnp.transpose(w1_oihw, (0, 2, 3, 1)).reshape(Cout, 9 * Cin)
    w2_mat = jnp.transpose(w2_oihw, (0, 2, 3, 1)).reshape(Cout, 9 * Cout)
    b1_col = b1.reshape(Cout, 1)
    b2_col = b2.reshape(Cout, 1)

    kernel = functools.partial(block_kernel, H=H, W=W, padl=PADL)

    out_flat = pl.pallas_call(
        kernel,
        out_shape=jax.ShapeDtypeStruct((N, Cout, HW), jnp.float32),
        grid_spec=pltpu.PrefetchScalarGridSpec(
            num_scalar_prefetch=0,
            grid=(N,),
            in_specs=[
                pl.BlockSpec((1, Cin, HW), lambda n: (n, 0, 0)),          # x
                pl.BlockSpec((Cin, HW), lambda n: (0, 0)),                # gamma
                pl.BlockSpec((Cin, HW), lambda n: (0, 0)),                # beta
                pl.BlockSpec((Cout, 9 * Cin), lambda n: (0, 0)),          # w1 (flat)
                pl.BlockSpec((Cout, 1), lambda n: (0, 0)),                # b1
                pl.BlockSpec((Cout, 9 * Cout), lambda n: (0, 0)),         # w2 (flat)
                pl.BlockSpec((Cout, 1), lambda n: (0, 0)),                # b2
            ],
            out_specs=pl.BlockSpec((1, Cout, HW), lambda n: (n, 0, 0)),
            scratch_shapes=[
                pltpu.VMEM((Cin, HW + 2 * PADL), jnp.float32),    # LN output + halo
                pltpu.VMEM((9 * Cin, HW), jnp.float32),           # im2col for conv1
                pltpu.VMEM((Cout, HW + 2 * PADL), jnp.float32),   # conv1 output + halo
                pltpu.VMEM((9 * Cout, HW), jnp.float32),          # im2col for conv2
            ],
        ),
        compiler_params=pltpu.CompilerParams(
            dimension_semantics=("parallel",)),      # batch elems independent (v7x 2xTC)
    )(x_flat, gamma, beta, w1_mat, b1_col, w2_mat, b2_col)

    return out_flat.reshape(N, Cout, H, W)


def block_reference(x, gamma, beta, w1, b1, w2, b2):
    """Pure-JAX reference (PyTorch semantics) for correctness checking."""
    mean = jnp.mean(x, axis=(1, 2, 3), keepdims=True)
    var = jnp.mean(jnp.square(x - mean), axis=(1, 2, 3), keepdims=True)
    h = (x - mean) * jax.lax.rsqrt(var + LN_EPS) * gamma[None] + beta[None]
    dn = ("NCHW", "OIHW", "NCHW")
    h = jax.lax.conv_general_dilated(h, w1, (1, 1), "SAME", dimension_numbers=dn)
    h = jax.nn.silu(h + b1.reshape(1, -1, 1, 1))
    h = jax.lax.conv_general_dilated(h, w2, (1, 1), "SAME", dimension_numbers=dn)
    h = jax.nn.silu(h + b2.reshape(1, -1, 1, 1))
    return h


if __name__ == "__main__":
    # Small shapes consistent with Block(shape=(Cin, H, W), Cin, Cout)
    N, Cin, Cout, H, W = 2, 4, 8, 16, 16

    key = jax.random.PRNGKey(0)
    kx, kw1, kb1, kw2, kb2 = jax.random.split(key, 5)

    x = jax.random.normal(kx, (N, Cin, H, W), jnp.float32)

    # LayerNorm affine params (PyTorch init: weight=1, bias=0), shape (C, H, W).
    gamma = jnp.ones((Cin, H, W), jnp.float32)
    beta = jnp.zeros((Cin, H, W), jnp.float32)

    # Conv params, deterministic random init, PyTorch OIHW layout.
    w1 = 0.1 * jax.random.normal(kw1, (Cout, Cin, 3, 3), jnp.float32)
    b1 = 0.1 * jax.random.normal(kb1, (Cout,), jnp.float32)
    w2 = 0.1 * jax.random.normal(kw2, (Cout, Cout, 3, 3), jnp.float32)
    b2 = 0.1 * jax.random.normal(kb2, (Cout,), jnp.float32)

    out = jax.block_until_ready(block_forward(x, gamma, beta, w1, b1, w2, b2))
    ref = jax.block_until_ready(block_reference(x, gamma, beta, w1, b1, w2, b2))

    max_err = float(jnp.max(jnp.abs(out - ref)))
    assert out.shape == (N, Cout, H, W), out.shape
    assert max_err < 2e-3, f"max abs error {max_err}"

    print("KERNEL_OK")
</pallas_src>

<mosaic_0001>
module attributes {stable_mosaic.version = 11 : i64} {
  func.func @block_kernel(%arg0: i32, %arg1: memref<1x4x256xf32, #tpu.memory_space<vmem>>, %arg2: memref<4x256xf32, #tpu.memory_space<vmem>>, %arg3: memref<4x256xf32, #tpu.memory_space<vmem>>, %arg4: memref<8x36xf32, #tpu.memory_space<vmem>>, %arg5: memref<8x1xf32, #tpu.memory_space<vmem>>, %arg6: memref<8x72xf32, #tpu.memory_space<vmem>>, %arg7: memref<8x1xf32, #tpu.memory_space<vmem>>, %arg8: memref<1x8x256xf32, #tpu.memory_space<vmem>>, %arg9: memref<4x512xf32, #tpu.memory_space<vmem>>, %arg10: memref<36x256xf32, #tpu.memory_space<vmem>>, %arg11: memref<8x512xf32, #tpu.memory_space<vmem>>, %arg12: memref<72x256xf32, #tpu.memory_space<vmem>>) attributes {dimension_semantics = [#tpu.dimension_semantics<parallel>], iteration_bounds = array<i64: 2>, scalar_prefetch = 0 : i64, scratch_operands = 4 : i64, tpu.core_type = #tpu.core_type<tc>, window_params = [{transform_indices = @transform_0, window_bounds = array<i64: 1, 4, 256>}, {pipeline_mode = #tpu.pipeline_mode<synchronous>, transform_indices = @transform_1, window_bounds = array<i64: 4, 256>}, {pipeline_mode = #tpu.pipeline_mode<synchronous>, transform_indices = @transform_2, window_bounds = array<i64: 4, 256>}, {pipeline_mode = #tpu.pipeline_mode<synchronous>, transform_indices = @transform_3, window_bounds = array<i64: 8, 36>}, {pipeline_mode = #tpu.pipeline_mode<synchronous>, transform_indices = @transform_4, window_bounds = array<i64: 8, 1>}, {pipeline_mode = #tpu.pipeline_mode<synchronous>, transform_indices = @transform_5, window_bounds = array<i64: 8, 72>}, {pipeline_mode = #tpu.pipeline_mode<synchronous>, transform_indices = @transform_6, window_bounds = array<i64: 8, 1>}, {transform_indices = @transform_7, window_bounds = array<i64: 1, 8, 256>}]} {
    %c0 = arith.constant 0 : index
    %c0_0 = arith.constant 0 : index
    %c0_1 = arith.constant 0 : index
    %0 = vector.load %arg1[%c0, %c0_0, %c0_1] : memref<1x4x256xf32, #tpu.memory_space<vmem>>, vector<1x4x256xf32>
    %1 = vector.shape_cast %0 : vector<1x4x256xf32> to vector<4x256xf32>
    %2 = vector.shape_cast %1 : vector<4x256xf32> to vector<1x4x256xf32>
    %cst = arith.constant dense<0.000000e+00> : vector<1xf32>
    %3 = vector.multi_reduction <add>, %2, %cst [1, 2] : vector<1x4x256xf32> to vector<1xf32>
    %4 = vector.shape_cast %3 : vector<1xf32> to vector<1x1x1xf32>
    %5 = vector.extract %4[0, 0, 0] : f32 from vector<1x1x1xf32>
    %cst_2 = arith.constant 1.024000e+03 : f32
    %6 = arith.divf %5, %cst_2 : f32
    %7 = vector.broadcast %6 : f32 to vector<4x256xf32>
    %8 = arith.subf %1, %7 : vector<4x256xf32>
    %9 = arith.mulf %8, %8 : vector<4x256xf32>
    %10 = vector.shape_cast %9 : vector<4x256xf32> to vector<1x4x256xf32>
    %cst_3 = arith.constant dense<0.000000e+00> : vector<1xf32>
    %11 = vector.multi_reduction <add>, %10, %cst_3 [1, 2] : vector<1x4x256xf32> to vector<1xf32>
    %12 = vector.shape_cast %11 : vector<1xf32> to vector<1x1x1xf32>
    %13 = vector.extract %12[0, 0, 0] : f32 from vector<1x1x1xf32>
    %cst_4 = arith.constant 1.024000e+03 : f32
    %14 = arith.divf %13, %cst_4 : f32
    %15 = vector.broadcast %6 : f32 to vector<4x256xf32>
    %16 = arith.subf %1, %15 : vector<4x256xf32>
    %cst_5 = arith.constant 9.99999974E-6 : f32
    %17 = arith.addf %14, %cst_5 : f32
    %18 = math.rsqrt %17 : f32
    %19 = vector.broadcast %18 : f32 to vector<4x256xf32>
    %20 = arith.mulf %16, %19 : vector<4x256xf32>
    %c0_6 = arith.constant 0 : index
    %c0_7 = arith.constant 0 : index
    %21 = vector.load %arg2[%c0_6, %c0_7] : memref<4x256xf32, #tpu.memory_space<vmem>>, vector<4x256xf32>
    %22 = arith.mulf %20, %21 : vector<4x256xf32>
    %c0_8 = arith.constant 0 : index
    %c0_9 = arith.constant 0 : index
    %23 = vector.load %arg3[%c0_8, %c0_9] : memref<4x256xf32, #tpu.memory_space<vmem>>, vector<4x256xf32>
    %24 = arith.addf %22, %23 : vector<4x256xf32>
    %c0_10 = arith.constant 0 : index
    %c128 = arith.constant 128 : index
    %25 = vector.load %arg9[%c0_10, %c128] : memref<4x512xf32, #tpu.memory_space<vmem>>, vector<4x256xf32>
    tpu.vector_store %arg9[%c0_10, %c128], %24 {strides = array<i32>} : memref<4x512xf32, #tpu.memory_space<vmem>>, vector<4x256xf32>,
    %26 = tpu.iota {dimensions = array<i32: 1>} : vector<4x256xi32>
    %c15_i32 = arith.constant 15 : i32
    %27 = vector.broadcast %c15_i32 : i32 to vector<4x256xi32>
    %28 = arith.andi %26, %27 : vector<4x256xi32>
    %c4_i32 = arith.constant 4 : i32
    %29 = vector.broadcast %c4_i32 : i32 to vector<4x256xi32>
    %30 = arith.shrsi %26, %29 : vector<4x256xi32>
    %c0_11 = arith.constant 0 : index
    %c111 = arith.constant 111 : index
    %31 = vector.load %arg9[%c0_11, %c111] : memref<4x512xf32, #tpu.memory_space<vmem>>, vector<4x256xf32>
    %c-1_i32 = arith.constant -1 : i32
    %32 = vector.broadcast %c-1_i32 : i32 to vector<4x256xi32>
    %33 = arith.addi %28, %32 : vector<4x256xi32>
    %c0_i32 = arith.constant 0 : i32
    %34 = vector.broadcast %c0_i32 : i32 to vector<4x256xi32>
    %35 = arith.cmpi sge, %33, %34 : vector<4x256xi32>
    %c-1_i32_12 = arith.constant -1 : i32
    %36 = vector.broadcast %c-1_i32_12 : i32 to vector<4x256xi32>
    %37 = arith.addi %28, %36 : vector<4x256xi32>
    %c16_i32 = arith.constant 16 : i32
    %38 = vector.broadcast %c16_i32 : i32 to vector<4x256xi32>
    %39 = arith.cmpi slt, %37, %38 : vector<4x256xi32>
    %40 = arith.andi %35, %39 : vector<4x256xi1>
    %c-1_i32_13 = arith.constant -1 : i32
    %41 = vector.broadcast %c-1_i32_13 : i32 to vector<4x256xi32>
    %42 = arith.addi %30, %41 : vector<4x256xi32>
    %c0_i32_14 = arith.constant 0 : i32
    %43 = vector.broadcast %c0_i32_14 : i32 to vector<4x256xi32>
    %44 = arith.cmpi sge, %42, %43 : vector<4x256xi32>
    %45 = arith.andi %40, %44 : vector<4x256xi1>
    %c-1_i32_15 = arith.constant -1 : i32
    %46 = vector.broadcast %c-1_i32_15 : i32 to vector<4x256xi32>
    %47 = arith.addi %30, %46 : vector<4x256xi32>
    %c16_i32_16 = arith.constant 16 : i32
    %48 = vector.broadcast %c16_i32_16 : i32 to vector<4x256xi32>
    %49 = arith.cmpi slt, %47, %48 : vector<4x256xi32>
    %50 = arith.andi %45, %49 : vector<4x256xi1>
    %cst_17 = arith.constant 0.000000e+00 : f32
    %51 = vector.broadcast %cst_17 : f32 to vector<4x256xf32>
    %52 = arith.select %50, %31, %51 : vector<4x256xi1>, vector<4x256xf32>
    %c0_18 = arith.constant 0 : index
    %c0_19 = arith.constant 0 : index
    %53 = vector.load %arg10[%c0_18, %c0_19] : memref<36x256xf32, #tpu.memory_space<vmem>>, vector<4x256xf32>
    tpu.vector_store %arg10[%c0_18, %c0_19], %52 {strides = array<i32>} : memref<36x256xf32, #tpu.memory_space<vmem>>, vector<4x256xf32>,
    %c0_20 = arith.constant 0 : index
    %c112 = arith.constant 112 : index
    %54 = vector.load %arg9[%c0_20, %c112] : memref<4x512xf32, #tpu.memory_space<vmem>>, vector<4x256xf32>
    %c0_i32_21 = arith.constant 0 : i32
    %55 = vector.broadcast %c0_i32_21 : i32 to vector<4x256xi32>
    %56 = arith.addi %28, %55 : vector<4x256xi32>
    %c0_i32_22 = arith.constant 0 : i32
    %57 = vector.broadcast %c0_i32_22 : i32 to vector<4x256xi32>
    %58 = arith.cmpi sge, %56, %57 : vector<4x256xi32>
    %c0_i32_23 = arith.constant 0 : i32
    %59 = vector.broadcast %c0_i32_23 : i32 to vector<4x256xi32>
    %60 = arith.addi %28, %59 : vector<4x256xi32>
    %c16_i32_24 = arith.constant 16 : i32
    %61 = vector.broadcast %c16_i32_24 : i32 to vector<4x256xi32>
    %62 = arith.cmpi slt, %60, %61 : vector<4x256xi32>
    %63 = arith.andi %58, %62 : vector<4x256xi1>
    %c-1_i32_25 = arith.constant -1 : i32
    %64 = vector.broadcast %c-1_i32_25 : i32 to vector<4x256xi32>
    %65 = arith.addi %30, %64 : vector<4x256xi32>
    %c0_i32_26 = arith.constant 0 : i32
    %66 = vector.broadcast %c0_i32_26 : i32 to vector<4x256xi32>
    %67 = arith.cmpi sge, %65, %66 : vector<4x256xi32>
    %68 = arith.andi %63, %67 : vector<4x256xi1>
    %c-1_i32_27 = arith.constant -1 : i32
    %69 = vector.broadcast %c-1_i32_27 : i32 to vector<4x256xi32>
    %70 = arith.addi %30, %69 : vector<4x256xi32>
    %c16_i32_28 = arith.constant 16 : i32
    %71 = vector.broadcast %c16_i32_28 : i32 to vector<4x256xi32>
    %72 = arith.cmpi slt, %70, %71 : vector<4x256xi32>
    %73 = arith.andi %68, %72 : vector<4x256xi1>
    %cst_29 = arith.constant 0.000000e+00 : f32
    %74 = vector.broadcast %cst_29 : f32 to vector<4x256xf32>
    %75 = arith.select %73, %54, %74 : vector<4x256xi1>, vector<4x256xf32>
    %c4 = arith.constant 4 : index
    %c0_30 = arith.constant 0 : index
    %76 = vector.load %arg10[%c4, %c0_30] : memref<36x256xf32, #tpu.memory_space<vmem>>, vector<4x256xf32>
    tpu.vector_store %arg10[%c4, %c0_30], %75 {strides = array<i32>} : memref<36x256xf32, #tpu.memory_space<vmem>>, vector<4x256xf32>,
    %c0_31 = arith.constant 0 : index
    %c113 = arith.constant 113 : index
    %77 = vector.load %arg9[%c0_31, %c113] : memref<4x512xf32, #tpu.memory_space<vmem>>, vector<4x256xf32>
    %c1_i32 = arith.constant 1 : i32
    %78 = vector.broadcast %c1_i32 : i32 to vector<4x256xi32>
    %79 = arith.addi %28, %78 : vector<4x256xi32>
    %c0_i32_32 = arith.constant 0 : i32
    %80 = vector.broadcast %c0_i32_32 : i32 to vector<4x256xi32>
    %81 = arith.cmpi sge, %79, %80 : vector<4x256xi32>
    %c1_i32_33 = arith.constant 1 : i32
    %82 = vector.broadcast %c1_i32_33 : i32 to vector<4x256xi32>
    %83 = arith.addi %28, %82 : vector<4x256xi32>
    %c16_i32_34 = arith.constant 16 : i32
    %84 = vector.broadcast %c16_i32_34 : i32 to vector<4x256xi32>
    %85 = arith.cmpi slt, %83, %84 : vector<4x256xi32>
    %86 = arith.andi %81, %85 : vector<4x256xi1>
    %c-1_i32_35 = arith.constant -1 : i32
    %87 = vector.broadcast %c-1_i32_35 : i32 to vector<4x256xi32>
    %88 = arith.addi %30, %87 : vector<4x256xi32>
    %c0_i32_36 = arith.constant 0 : i32
    %89 = vector.broadcast %c0_i32_36 : i32 to vector<4x256xi32>
    %90 = arith.cmpi sge, %88, %89 : vector<4x256xi32>
    %91 = arith.andi %86, %90 : vector<4x256xi1>
    %c-1_i32_37 = arith.constant -1 : i32
    %92 = vector.broadcast %c-1_i32_37 : i32 to vector<4x256xi32>
    %93 = arith.addi %30, %92 : vector<4x256xi32>
    %c16_i32_38 = arith.constant 16 : i32
    %94 = vector.broadcast %c16_i32_38 : i32 to vector<4x256xi32>
    %95 = arith.cmpi slt, %93, %94 : vector<4x256xi32>
    %96 = arith.andi %91, %95 : vector<4x256xi1>
    %cst_39 = arith.constant 0.000000e+00 : f32
    %97 = vector.broadcast %cst_39 : f32 to vector<4x256xf32>
    %98 = arith.select %96, %77, %97 : vector<4x256xi1>, vector<4x256xf32>
    %c8 = arith.constant 8 : index
    %c0_40 = arith.constant 0 : index
    %99 = vector.load %arg10[%c8, %c0_40] : memref<36x256xf32, #tpu.memory_space<vmem>>, vector<4x256xf32>
    tpu.vector_store %arg10[%c8, %c0_40], %98 {strides = array<i32>} : memref<36x256xf32, #tpu.memory_space<vmem>>, vector<4x256xf32>,
    %c0_41 = arith.constant 0 : index
    %c127 = arith.constant 127 : index
    %100 = vector.load %arg9[%c0_41, %c127] : memref<4x512xf32, #tpu.memory_space<vmem>>, vector<4x256xf32>
    %c-1_i32_42 = arith.constant -1 : i32
    %101 = vector.broadcast %c-1_i32_42 : i32 to vector<4x256xi32>
    %102 = arith.addi %28, %101 : vector<4x256xi32>
    %c0_i32_43 = arith.constant 0 : i32
    %103 = vector.broadcast %c0_i32_43 : i32 to vector<4x256xi32>
    %104 = arith.cmpi sge, %102, %103 : vector<4x256xi32>
    %c-1_i32_44 = arith.constant -1 : i32
    %105 = vector.broadcast %c-1_i32_44 : i32 to vector<4x256xi32>
    %106 = arith.addi %28, %105 : vector<4x256xi32>
    %c16_i32_45 = arith.constant 16 : i32
    %107 = vector.broadcast %c16_i32_45 : i32 to vector<4x256xi32>
    %108 = arith.cmpi slt, %106, %107 : vector<4x256xi32>
    %109 = arith.andi %104, %108 : vector<4x256xi1>
    %c0_i32_46 = arith.constant 0 : i32
    %110 = vector.broadcast %c0_i32_46 : i32 to vector<4x256xi32>
    %111 = arith.addi %30, %110 : vector<4x256xi32>
    %c0_i32_47 = arith.constant 0 : i32
    %112 = vector.broadcast %c0_i32_47 : i32 to vector<4x256xi32>
    %113 = arith.cmpi sge, %111, %112 : vector<4x256xi32>
    %114 = arith.andi %109, %113 : vector<4x256xi1>
    %c0_i32_48 = arith.constant 0 : i32
    %115 = vector.broadcast %c0_i32_48 : i32 to vector<4x256xi32>
    %116 = arith.addi %30, %115 : vector<4x256xi32>
    %c16_i32_49 = arith.constant 16 : i32
    %117 = vector.broadcast %c16_i32_49 : i32 to vector<4x256xi32>
    %118 = arith.cmpi slt, %116, %117 : vector<4x256xi32>
    %119 = arith.andi %114, %118 : vector<4x256xi1>
    %cst_50 = arith.constant 0.000000e+00 : f32
    %120 = vector.broadcast %cst_50 : f32 to vector<4x256xf32>
    %121 = arith.select %119, %100, %120 : vector<4x256xi1>, vector<4x256xf32>
    %c12 = arith.constant 12 : index
    %c0_51 = arith.constant 0 : index
    %122 = vector.load %arg10[%c12, %c0_51] : memref<36x256xf32, #tpu.memory_space<vmem>>, vector<4x256xf32>
    tpu.vector_store %arg10[%c12, %c0_51], %121 {strides = array<i32>} : memref<36x256xf32, #tpu.memory_space<vmem>>, vector<4x256xf32>,
    %c0_52 = arith.constant 0 : index
    %c128_53 = arith.constant 128 : index
    %123 = vector.load %arg9[%c0_52, %c128_53] : memref<4x512xf32, #tpu.memory_space<vmem>>, vector<4x256xf32>
    %c0_i32_54 = arith.constant 0 : i32
    %124 = vector.broadcast %c0_i32_54 : i32 to vector<4x256xi32>
    %125 = arith.addi %28, %124 : vector<4x256xi32>
    %c0_i32_55 = arith.constant 0 : i32
    %126 = vector.broadcast %c0_i32_55 : i32 to vector<4x256xi32>
    %127 = arith.cmpi sge, %125, %126 : vector<4x256xi32>
    %c0_i32_56 = arith.constant 0 : i32
    %128 = vector.broadcast %c0_i32_56 : i32 to vector<4x256xi32>
    %129 = arith.addi %28, %128 : vector<4x256xi32>
    %c16_i32_57 = arith.constant 16 : i32
    %130 = vector.broadcast %c16_i32_57 : i32 to vector<4x256xi32>
    %131 = arith.cmpi slt, %129, %130 : vector<4x256xi32>
    %132 = arith.andi %127, %131 : vector<4x256xi1>
    %c0_i32_58 = arith.constant 0 : i32
    %133 = vector.broadcast %c0_i32_58 : i32 to vector<4x256xi32>
    %134 = arith.addi %30, %133 : vector<4x256xi32>
    %c0_i32_59 = arith.constant 0 : i32
    %135 = vector.broadcast %c0_i32_59 : i32 to vector<4x256xi32>
    %136 = arith.cmpi sge, %134, %135 : vector<4x256xi32>
    %137 = arith.andi %132, %136 : vector<4x256xi1>
    %c0_i32_60 = arith.constant 0 : i32
    %138 = vector.broadcast %c0_i32_60 : i32 to vector<4x256xi32>
    %139 = arith.addi %30, %138 : vector<4x256xi32>
    %c16_i32_61 = arith.constant 16 : i32
    %140 = vector.broadcast %c16_i32_61 : i32 to vector<4x256xi32>
    %141 = arith.cmpi slt, %139, %140 : vector<4x256xi32>
    %142 = arith.andi %137, %141 : vector<4x256xi1>
    %cst_62 = arith.constant 0.000000e+00 : f32
    %143 = vector.broadcast %cst_62 : f32 to vector<4x256xf32>
    %144 = arith.select %142, %123, %143 : vector<4x256xi1>, vector<4x256xf32>
    %c16 = arith.constant 16 : index
    %c0_63 = arith.constant 0 : index
    %145 = vector.load %arg10[%c16, %c0_63] : memref<36x256xf32, #tpu.memory_space<vmem>>, vector<4x256xf32>
    tpu.vector_store %arg10[%c16, %c0_63], %144 {strides = array<i32>} : memref<36x256xf32, #tpu.memory_space<vmem>>, vector<4x256xf32>,
    %c0_64 = arith.constant 0 : index
    %c129 = arith.constant 129 : index
    %146 = vector.load %arg9[%c0_64, %c129] : memref<4x512xf32, #tpu.memory_space<vmem>>, vector<4x256xf32>
    %c1_i32_65 = arith.constant 1 : i32
    %147 = vector.broadcast %c1_i32_65 : i32 to vector<4x256xi32>
    %148 = arith.addi %28, %147 : vector<4x256xi32>
    %c0_i32_66 = arith.constant 0 : i32
    %149 = vector.broadcast %c0_i32_66 : i32 to vector<4x256xi32>
    %150 = arith.cmpi sge, %148, %149 : vector<4x256xi32>
    %c1_i32_67 = arith.constant 1 : i32
    %151 = vector.broadcast %c1_i32_67 : i32 to vector<4x256xi32>
    %152 = arith.addi %28, %151 : vector<4x256xi32>
    %c16_i32_68 = arith.constant 16 : i32
    %153 = vector.broadcast %c16_i32_68 : i32 to vector<4x256xi32>
    %154 = arith.cmpi slt, %152, %153 : vector<4x256xi32>
    %155 = arith.andi %150, %154 : vector<4x256xi1>
    %c0_i32_69 = arith.constant 0 : i32
    %156 = vector.broadcast %c0_i32_69 : i32 to vector<4x256xi32>
    %157 = arith.addi %30, %156 : vector<4x256xi32>
    %c0_i32_70 = arith.constant 0 : i32
    %158 = vector.broadcast %c0_i32_70 : i32 to vector<4x256xi32>
    %159 = arith.cmpi sge, %157, %158 : vector<4x256xi32>
    %160 = arith.andi %155, %159 : vector<4x256xi1>
    %c0_i32_71 = arith.constant 0 : i32
    %161 = vector.broadcast %c0_i32_71 : i32 to vector<4x256xi32>
    %162 = arith.addi %30, %161 : vector<4x256xi32>
    %c16_i32_72 = arith.constant 16 : i32
    %163 = vector.broadcast %c16_i32_72 : i32 to vector<4x256xi32>
    %164 = arith.cmpi slt, %162, %163 : vector<4x256xi32>
    %165 = arith.andi %160, %164 : vector<4x256xi1>
    %cst_73 = arith.constant 0.000000e+00 : f32
    %166 = vector.broadcast %cst_73 : f32 to vector<4x256xf32>
    %167 = arith.select %165, %146, %166 : vector<4x256xi1>, vector<4x256xf32>
    %c20 = arith.constant 20 : index
    %c0_74 = arith.constant 0 : index
    %168 = vector.load %arg10[%c20, %c0_74] : memref<36x256xf32, #tpu.memory_space<vmem>>, vector<4x256xf32>
    tpu.vector_store %arg10[%c20, %c0_74], %167 {strides = array<i32>} : memref<36x256xf32, #tpu.memory_space<vmem>>, vector<4x256xf32>,
    %c0_75 = arith.constant 0 : index
    %c143 = arith.constant 143 : index
    %169 = vector.load %arg9[%c0_75, %c143] : memref<4x512xf32, #tpu.memory_space<vmem>>, vector<4x256xf32>
    %c-1_i32_76 = arith.constant -1 : i32
    %170 = vector.broadcast %c-1_i32_76 : i32 to vector<4x256xi32>
    %171 = arith.addi %28, %170 : vector<4x256xi32>
    %c0_i32_77 = arith.constant 0 : i32
    %172 = vector.broadcast %c0_i32_77 : i32 to vector<4x256xi32>
    %173 = arith.cmpi sge, %171, %172 : vector<4x256xi32>
    %c-1_i32_78 = arith.constant -1 : i32
    %174 = vector.broadcast %c-1_i32_78 : i32 to vector<4x256xi32>
    %175 = arith.addi %28, %174 : vector<4x256xi32>
    %c16_i32_79 = arith.constant 16 : i32
    %176 = vector.broadcast %c16_i32_79 : i32 to vector<4x256xi32>
    %177 = arith.cmpi slt, %175, %176 : vector<4x256xi32>
    %178 = arith.andi %173, %177 : vector<4x256xi1>
    %c1_i32_80 = arith.constant 1 : i32
    %179 = vector.broadcast %c1_i32_80 : i32 to vector<4x256xi32>
    %180 = arith.addi %30, %179 : vector<4x256xi32>
    %c0_i32_81 = arith.constant 0 : i32
    %181 = vector.broadcast %c0_i32_81 : i32 to vector<4x256xi32>
    %182 = arith.cmpi sge, %180, %181 : vector<4x256xi32>
    %183 = arith.andi %178, %182 : vector<4x256xi1>
    %c1_i32_82 = arith.constant 1 : i32
    %184 = vector.broadcast %c1_i32_82 : i32 to vector<4x256xi32>
    %185 = arith.addi %30, %184 : vector<4x256xi32>
    %c16_i32_83 = arith.constant 16 : i32
    %186 = vector.broadcast %c16_i32_83 : i32 to vector<4x256xi32>
    %187 = arith.cmpi slt, %185, %186 : vector<4x256xi32>
    %188 = arith.andi %183, %187 : vector<4x256xi1>
    %cst_84 = arith.constant 0.000000e+00 : f32
    %189 = vector.broadcast %cst_84 : f32 to vector<4x256xf32>
    %190 = arith.select %188, %169, %189 : vector<4x256xi1>, vector<4x256xf32>
    %c24 = arith.constant 24 : index
    %c0_85 = arith.constant 0 : index
    %191 = vector.load %arg10[%c24, %c0_85] : memref<36x256xf32, #tpu.memory_space<vmem>>, vector<4x256xf32>
    tpu.vector_store %arg10[%c24, %c0_85], %190 {strides = array<i32>} : memref<36x256xf32, #tpu.memory_space<vmem>>, vector<4x256xf32>,
    %c0_86 = arith.constant 0 : index
    %c144 = arith.constant 144 : index
    %192 = vector.load %arg9[%c0_86, %c144] : memref<4x512xf32, #tpu.memory_space<vmem>>, vector<4x256xf32>
    %c0_i32_87 = arith.constant 0 : i32
    %193 = vector.broadcast %c0_i32_87 : i32 to vector<4x256xi32>
    %194 = arith.addi %28, %193 : vector<4x256xi32>
    %c0_i32_88 = arith.constant 0 : i32
    %195 = vector.broadcast %c0_i32_88 : i32 to vector<4x256xi32>
    %196 = arith.cmpi sge, %194, %195 : vector<4x256xi32>
    %c0_i32_89 = arith.constant 0 : i32
    %197 = vector.broadcast %c0_i32_89 : i32 to vector<4x256xi32>
    %198 = arith.addi %28, %197 : vector<4x256xi32>
    %c16_i32_90 = arith.constant 16 : i32
    %199 = vector.broadcast %c16_i32_90 : i32 to vector<4x256xi32>
    %200 = arith.cmpi slt, %198, %199 : vector<4x256xi32>
    %201 = arith.andi %196, %200 : vector<4x256xi1>
    %c1_i32_91 = arith.constant 1 : i32
    %202 = vector.broadcast %c1_i32_91 : i32 to vector<4x256xi32>
    %203 = arith.addi %30, %202 : vector<4x256xi32>
    %c0_i32_92 = arith.constant 0 : i32
    %204 = vector.broadcast %c0_i32_92 : i32 to vector<4x256xi32>
    %205 = arith.cmpi sge, %203, %204 : vector<4x256xi32>
    %206 = arith.andi %201, %205 : vector<4x256xi1>
    %c1_i32_93 = arith.constant 1 : i32
    %207 = vector.broadcast %c1_i32_93 : i32 to vector<4x256xi32>
    %208 = arith.addi %30, %207 : vector<4x256xi32>
    %c16_i32_94 = arith.constant 16 : i32
    %209 = vector.broadcast %c16_i32_94 : i32 to vector<4x256xi32>
    %210 = arith.cmpi slt, %208, %209 : vector<4x256xi32>
    %211 = arith.andi %206, %210 : vector<4x256xi1>
    %cst_95 = arith.constant 0.000000e+00 : f32
    %212 = vector.broadcast %cst_95 : f32 to vector<4x256xf32>
    %213 = arith.select %211, %192, %212 : vector<4x256xi1>, vector<4x256xf32>
    %c28 = arith.constant 28 : index
    %c0_96 = arith.constant 0 : index
    %214 = vector.load %arg10[%c28, %c0_96] : memref<36x256xf32, #tpu.memory_space<vmem>>, vector<4x256xf32>
    tpu.vector_store %arg10[%c28, %c0_96], %213 {strides = array<i32>} : memref<36x256xf32, #tpu.memory_space<vmem>>, vector<4x256xf32>,
    %c0_97 = arith.constant 0 : index
    %c145 = arith.constant 145 : index
    %215 = vector.load %arg9[%c0_97, %c145] : memref<4x512xf32, #tpu.memory_space<vmem>>, vector<4x256xf32>
    %c1_i32_98 = arith.constant 1 : i32
    %216 = vector.broadcast %c1_i32_98 : i32 to vector<4x256xi32>
    %217 = arith.addi %28, %216 : vector<4x256xi32>
    %c0_i32_99 = arith.constant 0 : i32
    %218 = vector.broadcast %c0_i32_99 : i32 to vector<4x256xi32>
    %219 = arith.cmpi sge, %217, %218 : vector<4x256xi32>
    %c1_i32_100 = arith.constant 1 : i32
    %220 = vector.broadcast %c1_i32_100 : i32 to vector<4x256xi32>
    %221 = arith.addi %28, %220 : vector<4x256xi32>
    %c16_i32_101 = arith.constant 16 : i32
    %222 = vector.broadcast %c16_i32_101 : i32 to vector<4x256xi32>
    %223 = arith.cmpi slt, %221, %222 : vector<4x256xi32>
    %224 = arith.andi %219, %223 : vector<4x256xi1>
    %c1_i32_102 = arith.constant 1 : i32
    %225 = vector.broadcast %c1_i32_102 : i32 to vector<4x256xi32>
    %226 = arith.addi %30, %225 : vector<4x256xi32>
    %c0_i32_103 = arith.constant 0 : i32
    %227 = vector.broadcast %c0_i32_103 : i32 to vector<4x256xi32>
    %228 = arith.cmpi sge, %226, %227 : vector<4x256xi32>
    %229 = arith.andi %224, %228 : vector<4x256xi1>
    %c1_i32_104 = arith.constant 1 : i32
    %230 = vector.broadcast %c1_i32_104 : i32 to vector<4x256xi32>
    %231 = arith.addi %30, %230 : vector<4x256xi32>
    %c16_i32_105 = arith.constant 16 : i32
    %232 = vector.broadcast %c16_i32_105 : i32 to vector<4x256xi32>
    %233 = arith.cmpi slt, %231, %232 : vector<4x256xi32>
    %234 = arith.andi %229, %233 : vector<4x256xi1>
    %cst_106 = arith.constant 0.000000e+00 : f32
    %235 = vector.broadcast %cst_106 : f32 to vector<4x256xf32>
    %236 = arith.select %234, %215, %235 : vector<4x256xi1>, vector<4x256xf32>
    %c32 = arith.constant 32 : index
    %c0_107 = arith.constant 0 : index
    %237 = vector.load %arg10[%c32, %c0_107] : memref<36x256xf32, #tpu.memory_space<vmem>>, vector<4x256xf32>
    tpu.vector_store %arg10[%c32, %c0_107], %236 {strides = array<i32>} : memref<36x256xf32, #tpu.memory_space<vmem>>, vector<4x256xf32>,
    %c0_108 = arith.constant 0 : index
    %c0_109 = arith.constant 0 : index
    %238 = vector.load %arg4[%c0_108, %c0_109] : memref<8x36xf32, #tpu.memory_space<vmem>>, vector<8x36xf32>
    %c0_110 = arith.constant 0 : index
    %c0_111 = arith.constant 0 : index
    %239 = vector.load %arg10[%c0_110, %c0_111] : memref<36x256xf32, #tpu.memory_space<vmem>>, vector<36x256xf32>
    %cst_112 = arith.constant dense<0.000000e+00> : vector<8x256xf32>
    %240 = tpu.matmul %238, %239, %cst_112 {dimension_numbers = #tpu.dot_dimension_numbers<[1], [0], [0], [1], [0, 0, 1, 1], [], []>} : vector<8x36xf32>, vector<36x256xf32>, vector<8x256xf32> -> vector<8x256xf32>
    %c0_113 = arith.constant 0 : index
    %c0_114 = arith.constant 0 : index
    %241 = vector.load %arg5[%c0_113, %c0_114] : memref<8x1xf32, #tpu.memory_space<vmem>>, vector<8x1xf32>
    %242 = vector.broadcast %241 : vector<8x1xf32> to vector<8x256xf32>
    %243 = arith.addf %240, %242 : vector<8x256xf32>
    %244 = arith.negf %243 : vector<8x256xf32>
    %245 = math.exp %244 : vector<8x256xf32>
    %cst_115 = arith.constant 1.000000e+00 : f32
    %246 = vector.broadcast %cst_115 : f32 to vector<8x256xf32>
    %247 = arith.addf %246, %245 : vector<8x256xf32>
    %248 = arith.divf %246, %247 : vector<8x256xf32>
    %249 = arith.mulf %243, %248 : vector<8x256xf32>
    %c0_116 = arith.constant 0 : index
    %c128_117 = arith.constant 128 : index
    %250 = vector.load %arg11[%c0_116, %c128_117] : memref<8x512xf32, #tpu.memory_space<vmem>>, vector<8x256xf32>
    tpu.vector_store %arg11[%c0_116, %c128_117], %249 {strides = array<i32>} : memref<8x512xf32, #tpu.memory_space<vmem>>, vector<8x256xf32>,
    %251 = tpu.iota {dimensions = array<i32: 1>} : vector<8x256xi32>
    %c15_i32_118 = arith.constant 15 : i32
    %252 = vector.broadcast %c15_i32_118 : i32 to vector<8x256xi32>
    %253 = arith.andi %251, %252 : vector<8x256xi32>
    %c4_i32_119 = arith.constant 4 : i32
    %254 = vector.broadcast %c4_i32_119 : i32 to vector<8x256xi32>
    %255 = arith.shrsi %251, %254 : vector<8x256xi32>
    %c0_120 = arith.constant 0 : index
    %c111_121 = arith.constant 111 : index
    %256 = vector.load %arg11[%c0_120, %c111_121] : memref<8x512xf32, #tpu.memory_space<vmem>>, vector<8x256xf32>
    %c-1_i32_122 = arith.constant -1 : i32
    %257 = vector.broadcast %c-1_i32_122 : i32 to vector<8x256xi32>
    %258 = arith.addi %253, %257 : vector<8x256xi32>
    %c0_i32_123 = arith.constant 0 : i32
    %259 = vector.broadcast %c0_i32_123 : i32 to vector<8x256xi32>
    %260 = arith.cmpi sge, %258, %259 : vector<8x256xi32>
    %c-1_i32_124 = arith.constant -1 : i32
    %261 = vector.broadcast %c-1_i32_124 : i32 to vector<8x256xi32>
    %262 = arith.addi %253, %261 : vector<8x256xi32>
    %c16_i32_125 = arith.constant 16 : i32
    %263 = vector.broadcast %c16_i32_125 : i32 to vector<8x256xi32>
    %264 = arith.cmpi slt, %262, %263 : vector<8x256xi32>
    %265 = arith.andi %260, %264 : vector<8x256xi1>
    %c-1_i32_126 = arith.constant -1 : i32
    %266 = vector.broadcast %c-1_i32_126 : i32 to vector<8x256xi32>
    %267 = arith.addi %255, %266 : vector<8x256xi32>
    %c0_i32_127 = arith.constant 0 : i32
    %268 = vector.broadcast %c0_i32_127 : i32 to vector<8x256xi32>
    %269 = arith.cmpi sge, %267, %268 : vector<8x256xi32>
    %270 = arith.andi %265, %269 : vector<8x256xi1>
    %c-1_i32_128 = arith.constant -1 : i32
    %271 = vector.broadcast %c-1_i32_128 : i32 to vector<8x256xi32>
    %272 = arith.addi %255, %271 : vector<8x256xi32>
    %c16_i32_129 = arith.constant 16 : i32
    %273 = vector.broadcast %c16_i32_129 : i32 to vector<8x256xi32>
    %274 = arith.cmpi slt, %272, %273 : vector<8x256xi32>
    %275 = arith.andi %270, %274 : vector<8x256xi1>
    %cst_130 = arith.constant 0.000000e+00 : f32
    %276 = vector.broadcast %cst_130 : f32 to vector<8x256xf32>
    %277 = arith.select %275, %256, %276 : vector<8x256xi1>, vector<8x256xf32>
    %c0_131 = arith.constant 0 : index
    %c0_132 = arith.constant 0 : index
    %278 = vector.load %arg12[%c0_131, %c0_132] : memref<72x256xf32, #tpu.memory_space<vmem>>, vector<8x256xf32>
    tpu.vector_store %arg12[%c0_131, %c0_132], %277 {strides = array<i32>} : memref<72x256xf32, #tpu.memory_space<vmem>>, vector<8x256xf32>,
    %c0_133 = arith.constant 0 : index
    %c112_134 = arith.constant 112 : index
    %279 = vector.load %arg11[%c0_133, %c112_134] : memref<8x512xf32, #tpu.memory_space<vmem>>, vector<8x256xf32>
    %c0_i32_135 = arith.constant 0 : i32
    %280 = vector.broadcast %c0_i32_135 : i32 to vector<8x256xi32>
    %281 = arith.addi %253, %280 : vector<8x256xi32>
    %c0_i32_136 = arith.constant 0 : i32
    %282 = vector.broadcast %c0_i32_136 : i32 to vector<8x256xi32>
    %283 = arith.cmpi sge, %281, %282 : vector<8x256xi32>
    %c0_i32_137 = arith.constant 0 : i32
    %284 = vector.broadcast %c0_i32_137 : i32 to vector<8x256xi32>
    %285 = arith.addi %253, %284 : vector<8x256xi32>
    %c16_i32_138 = arith.constant 16 : i32
    %286 = vector.broadcast %c16_i32_138 : i32 to vector<8x256xi32>
    %287 = arith.cmpi slt, %285, %286 : vector<8x256xi32>
    %288 = arith.andi %283, %287 : vector<8x256xi1>
    %c-1_i32_139 = arith.constant -1 : i32
    %289 = vector.broadcast %c-1_i32_139 : i32 to vector<8x256xi32>
    %290 = arith.addi %255, %289 : vector<8x256xi32>
    %c0_i32_140 = arith.constant 0 : i32
    %291 = vector.broadcast %c0_i32_140 : i32 to vector<8x256xi32>
    %292 = arith.cmpi sge, %290, %291 : vector<8x256xi32>
    %293 = arith.andi %288, %292 : vector<8x256xi1>
    %c-1_i32_141 = arith.constant -1 : i32
    %294 = vector.broadcast %c-1_i32_141 : i32 to vector<8x256xi32>
    %295 = arith.addi %255, %294 : vector<8x256xi32>
    %c16_i32_142 = arith.constant 16 : i32
    %296 = vector.broadcast %c16_i32_142 : i32 to vector<8x256xi32>
    %297 = arith.cmpi slt, %295, %296 : vector<8x256xi32>
    %298 = arith.andi %293, %297 : vector<8x256xi1>
    %cst_143 = arith.constant 0.000000e+00 : f32
    %299 = vector.broadcast %cst_143 : f32 to vector<8x256xf32>
    %300 = arith.select %298, %279, %299 : vector<8x256xi1>, vector<8x256xf32>
    %c8_144 = arith.constant 8 : index
    %c0_145 = arith.constant 0 : index
    %301 = vector.load %arg12[%c8_144, %c0_145] : memref<72x256xf32, #tpu.memory_space<vmem>>, vector<8x256xf32>
    tpu.vector_store %arg12[%c8_144, %c0_145], %300 {strides = array<i32>} : memref<72x256xf32, #tpu.memory_space<vmem>>, vector<8x256xf32>,
    %c0_146 = arith.constant 0 : index
    %c113_147 = arith.constant 113 : index
    %302 = vector.load %arg11[%c0_146, %c113_147] : memref<8x512xf32, #tpu.memory_space<vmem>>, vector<8x256xf32>
    %c1_i32_148 = arith.constant 1 : i32
    %303 = vector.broadcast %c1_i32_148 : i32 to vector<8x256xi32>
    %304 = arith.addi %253, %303 : vector<8x256xi32>
    %c0_i32_149 = arith.constant 0 : i32
    %305 = vector.broadcast %c0_i32_149 : i32 to vector<8x256xi32>
    %306 = arith.cmpi sge, %304, %305 : vector<8x256xi32>
    %c1_i32_150 = arith.constant 1 : i32
    %307 = vector.broadcast %c1_i32_150 : i32 to vector<8x256xi32>
    %308 = arith.addi %253, %307 : vector<8x256xi32>
    %c16_i32_151 = arith.constant 16 : i32
    %309 = vector.broadcast %c16_i32_151 : i32 to vector<8x256xi32>
    %310 = arith.cmpi slt, %308, %309 : vector<8x256xi32>
    %311 = arith.andi %306, %310 : vector<8x256xi1>
    %c-1_i32_152 = arith.constant -1 : i32
    %312 = vector.broadcast %c-1_i32_152 : i32 to vector<8x256xi32>
    %313 = arith.addi %255, %312 : vector<8x256xi32>
    %c0_i32_153 = arith.constant 0 : i32
    %314 = vector.broadcast %c0_i32_153 : i32 to vector<8x256xi32>
    %315 = arith.cmpi sge, %313, %314 : vector<8x256xi32>
    %316 = arith.andi %311, %315 : vector<8x256xi1>
    %c-1_i32_154 = arith.constant -1 : i32
    %317 = vector.broadcast %c-1_i32_154 : i32 to vector<8x256xi32>
    %318 = arith.addi %255, %317 : vector<8x256xi32>
    %c16_i32_155 = arith.constant 16 : i32
    %319 = vector.broadcast %c16_i32_155 : i32 to vector<8x256xi32>
    %320 = arith.cmpi slt, %318, %319 : vector<8x256xi32>
    %321 = arith.andi %316, %320 : vector<8x256xi1>
    %cst_156 = arith.constant 0.000000e+00 : f32
    %322 = vector.broadcast %cst_156 : f32 to vector<8x256xf32>
    %323 = arith.select %321, %302, %322 : vector<8x256xi1>, vector<8x256xf32>
    %c16_157 = arith.constant 16 : index
    %c0_158 = arith.constant 0 : index
    %324 = vector.load %arg12[%c16_157, %c0_158] : memref<72x256xf32, #tpu.memory_space<vmem>>, vector<8x256xf32>
    tpu.vector_store %arg12[%c16_157, %c0_158], %323 {strides = array<i32>} : memref<72x256xf32, #tpu.memory_space<vmem>>, vector<8x256xf32>,
    %c0_159 = arith.constant 0 : index
    %c127_160 = arith.constant 127 : index
    %325 = vector.load %arg11[%c0_159, %c127_160] : memref<8x512xf32, #tpu.memory_space<vmem>>, vector<8x256xf32>
    %c-1_i32_161 = arith.constant -1 : i32
    %326 = vector.broadcast %c-1_i32_161 : i32 to vector<8x256xi32>
    %327 = arith.addi %253, %326 : vector<8x256xi32>
    %c0_i32_162 = arith.constant 0 : i32
    %328 = vector.broadcast %c0_i32_162 : i32 to vector<8x256xi32>
    %329 = arith.cmpi sge, %327, %328 : vector<8x256xi32>
    %c-1_i32_163 = arith.constant -1 : i32
    %330 = vector.broadcast %c-1_i32_163 : i32 to vector<8x256xi32>
    %331 = arith.addi %253, %330 : vector<8x256xi32>
    %c16_i32_164 = arith.constant 16 : i32
    %332 = vector.broadcast %c16_i32_164 : i32 to vector<8x256xi32>
    %333 = arith.cmpi slt, %331, %332 : vector<8x256xi32>
    %334 = arith.andi %329, %333 : vector<8x256xi1>
    %c0_i32_165 = arith.constant 0 : i32
    %335 = vector.broadcast %c0_i32_165 : i32 to vector<8x256xi32>
    %336 = arith.addi %255, %335 : vector<8x256xi32>
    %c0_i32_166 = arith.constant 0 : i32
    %337 = vector.broadcast %c0_i32_166 : i32 to vector<8x256xi32>
    %338 = arith.cmpi sge, %336, %337 : vector<8x256xi32>
    %339 = arith.andi %334, %338 : vector<8x256xi1>
    %c0_i32_167 = arith.constant 0 : i32
    %340 = vector.broadcast %c0_i32_167 : i32 to vector<8x256xi32>
    %341 = arith.addi %255, %340 : vector<8x256xi32>
    %c16_i32_168 = arith.constant 16 : i32
    %342 = vector.broadcast %c16_i32_168 : i32 to vector<8x256xi32>
    %343 = arith.cmpi slt, %341, %342 : vector<8x256xi32>
    %344 = arith.andi %339, %343 : vector<8x256xi1>
    %cst_169 = arith.constant 0.000000e+00 : f32
    %345 = vector.broadcast %cst_169 : f32 to vector<8x256xf32>
    %346 = arith.select %344, %325, %345 : vector<8x256xi1>, vector<8x256xf32>
    %c24_170 = arith.constant 24 : index
    %c0_171 = arith.constant 0 : index
    %347 = vector.load %arg12[%c24_170, %c0_171] : memref<72x256xf32, #tpu.memory_space<vmem>>, vector<8x256xf32>
    tpu.vector_store %arg12[%c24_170, %c0_171], %346 {strides = array<i32>} : memref<72x256xf32, #tpu.memory_space<vmem>>, vector<8x256xf32>,
    %c0_172 = arith.constant 0 : index
    %c128_173 = arith.constant 128 : index
    %348 = vector.load %arg11[%c0_172, %c128_173] : memref<8x512xf32, #tpu.memory_space<vmem>>, vector<8x256xf32>
    %c0_i32_174 = arith.constant 0 : i32
    %349 = vector.broadcast %c0_i32_174 : i32 to vector<8x256xi32>
    %350 = arith.addi %253, %349 : vector<8x256xi32>
    %c0_i32_175 = arith.constant 0 : i32
    %351 = vector.broadcast %c0_i32_175 : i32 to vector<8x256xi32>
    %352 = arith.cmpi sge, %350, %351 : vector<8x256xi32>
    %c0_i32_176 = arith.constant 0 : i32
    %353 = vector.broadcast %c0_i32_176 : i32 to vector<8x256xi32>
    %354 = arith.addi %253, %353 : vector<8x256xi32>
    %c16_i32_177 = arith.constant 16 : i32
    %355 = vector.broadcast %c16_i32_177 : i32 to vector<8x256xi32>
    %356 = arith.cmpi slt, %354, %355 : vector<8x256xi32>
    %357 = arith.andi %352, %356 : vector<8x256xi1>
    %c0_i32_178 = arith.constant 0 : i32
    %358 = vector.broadcast %c0_i32_178 : i32 to vector<8x256xi32>
    %359 = arith.addi %255, %358 : vector<8x256xi32>
    %c0_i32_179 = arith.constant 0 : i32
    %360 = vector.broadcast %c0_i32_179 : i32 to vector<8x256xi32>
    %361 = arith.cmpi sge, %359, %360 : vector<8x256xi32>
    %362 = arith.andi %357, %361 : vector<8x256xi1>
    %c0_i32_180 = arith.constant 0 : i32
    %363 = vector.broadcast %c0_i32_180 : i32 to vector<8x256xi32>
    %364 = arith.addi %255, %363 : vector<8x256xi32>
    %c16_i32_181 = arith.constant 16 : i32
    %365 = vector.broadcast %c16_i32_181 : i32 to vector<8x256xi32>
    %366 = arith.cmpi slt, %364, %365 : vector<8x256xi32>
    %367 = arith.andi %362, %366 : vector<8x256xi1>
    %cst_182 = arith.constant 0.000000e+00 : f32
    %368 = vector.broadcast %cst_182 : f32 to vector<8x256xf32>
    %369 = arith.select %367, %348, %368 : vector<8x256xi1>, vector<8x256xf32>
    %c32_183 = arith.constant 32 : index
    %c0_184 = arith.constant 0 : index
    %370 = vector.load %arg12[%c32_183, %c0_184] : memref<72x256xf32, #tpu.memory_space<vmem>>, vector<8x256xf32>
    tpu.vector_store %arg12[%c32_183, %c0_184], %369 {strides = array<i32>} : memref<72x256xf32, #tpu.memory_space<vmem>>, vector<8x256xf32>,
    %c0_185 = arith.constant 0 : index
    %c129_186 = arith.constant 129 : index
    %371 = vector.load %arg11[%c0_185, %c129_186] : memref<8x512xf32, #tpu.memory_space<vmem>>, vector<8x256xf32>
    %c1_i32_187 = arith.constant 1 : i32
    %372 = vector.broadcast %c1_i32_187 : i32 to vector<8x256xi32>
    %373 = arith.addi %253, %372 : vector<8x256xi32>
    %c0_i32_188 = arith.constant 0 : i32
    %374 = vector.broadcast %c0_i32_188 : i32 to vector<8x256xi32>
    %375 = arith.cmpi sge, %373, %374 : vector<8x256xi32>
    %c1_i32_189 = arith.constant 1 : i32
    %376 = vector.broadcast %c1_i32_189 : i32 to vector<8x256xi32>
    %377 = arith.addi %253, %376 : vector<8x256xi32>
    %c16_i32_190 = arith.constant 16 : i32
    %378 = vector.broadcast %c16_i32_190 : i32 to vector<8x256xi32>
    %379 = arith.cmpi slt, %377, %378 : vector<8x256xi32>
    %380 = arith.andi %375, %379 : vector<8x256xi1>
    %c0_i32_191 = arith.constant 0 : i32
    %381 = vector.broadcast %c0_i32_191 : i32 to vector<8x256xi32>
    %382 = arith.addi %255, %381 : vector<8x256xi32>
    %c0_i32_192 = arith.constant 0 : i32
    %383 = vector.broadcast %c0_i32_192 : i32 to vector<8x256xi32>
    %384 = arith.cmpi sge, %382, %383 : vector<8x256xi32>
    %385 = arith.andi %380, %384 : vector<8x256xi1>
    %c0_i32_193 = arith.constant 0 : i32
    %386 = vector.broadcast %c0_i32_193 : i32 to vector<8x256xi32>
    %387 = arith.addi %255, %386 : vector<8x256xi32>
    %c16_i32_194 = arith.constant 16 : i32
    %388 = vector.broadcast %c16_i32_194 : i32 to vector<8x256xi32>
    %389 = arith.cmpi slt, %387, %388 : vector<8x256xi32>
    %390 = arith.andi %385, %389 : vector<8x256xi1>
    %cst_195 = arith.constant 0.000000e+00 : f32
    %391 = vector.broadcast %cst_195 : f32 to vector<8x256xf32>
    %392 = arith.select %390, %371, %391 : vector<8x256xi1>, vector<8x256xf32>
    %c40 = arith.constant 40 : index
    %c0_196 = arith.constant 0 : index
    %393 = vector.load %arg12[%c40, %c0_196] : memref<72x256xf32, #tpu.memory_space<vmem>>, vector<8x256xf32>
    tpu.vector_store %arg12[%c40, %c0_196], %392 {strides = array<i32>} : memref<72x256xf32, #tpu.memory_space<vmem>>, vector<8x256xf32>,
    %c0_197 = arith.constant 0 : index
    %c143_198 = arith.constant 143 : index
    %394 = vector.load %arg11[%c0_197, %c143_198] : memref<8x512xf32, #tpu.memory_space<vmem>>, vector<8x256xf32>
    %c-1_i32_199 = arith.constant -1 : i32
    %395 = vector.broadcast %c-1_i32_199 : i32 to vector<8x256xi32>
    %396 = arith.addi %253, %395 : vector<8x256xi32>
    %c0_i32_200 = arith.constant 0 : i32
    %397 = vector.broadcast %c0_i32_200 : i32 to vector<8x256xi32>
    %398 = arith.cmpi sge, %396, %397 : vector<8x256xi32>
    %c-1_i32_201 = arith.constant -1 : i32
    %399 = vector.broadcast %c-1_i32_201 : i32 to vector<8x256xi32>
    %400 = arith.addi %253, %399 : vector<8x256xi32>
    %c16_i32_202 = arith.constant 16 : i32
    %401 = vector.broadcast %c16_i32_202 : i32 to vector<8x256xi32>
    %402 = arith.cmpi slt, %400, %401 : vector<8x256xi32>
    %403 = arith.andi %398, %402 : vector<8x256xi1>
    %c1_i32_203 = arith.constant 1 : i32
    %404 = vector.broadcast %c1_i32_203 : i32 to vector<8x256xi32>
    %405 = arith.addi %255, %404 : vector<8x256xi32>
    %c0_i32_204 = arith.constant 0 : i32
    %406 = vector.broadcast %c0_i32_204 : i32 to vector<8x256xi32>
    %407 = arith.cmpi sge, %405, %406 : vector<8x256xi32>
    %408 = arith.andi %403, %407 : vector<8x256xi1>
    %c1_i32_205 = arith.constant 1 : i32
    %409 = vector.broadcast %c1_i32_205 : i32 to vector<8x256xi32>
    %410 = arith.addi %255, %409 : vector<8x256xi32>
    %c16_i32_206 = arith.constant 16 : i32
    %411 = vector.broadcast %c16_i32_206 : i32 to vector<8x256xi32>
    %412 = arith.cmpi slt, %410, %411 : vector<8x256xi32>
    %413 = arith.andi %408, %412 : vector<8x256xi1>
    %cst_207 = arith.constant 0.000000e+00 : f32
    %414 = vector.broadcast %cst_207 : f32 to vector<8x256xf32>
    %415 = arith.select %413, %394, %414 : vector<8x256xi1>, vector<8x256xf32>
    %c48 = arith.constant 48 : index
    %c0_208 = arith.constant 0 : index
    %416 = vector.load %arg12[%c48, %c0_208] : memref<72x256xf32, #tpu.memory_space<vmem>>, vector<8x256xf32>
    tpu.vector_store %arg12[%c48, %c0_208], %415 {strides = array<i32>} : memref<72x256xf32, #tpu.memory_space<vmem>>, vector<8x256xf32>,
    %c0_209 = arith.constant 0 : index
    %c144_210 = arith.constant 144 : index
    %417 = vector.load %arg11[%c0_209, %c144_210] : memref<8x512xf32, #tpu.memory_space<vmem>>, vector<8x256xf32>
    %c0_i32_211 = arith.constant 0 : i32
    %418 = vector.broadcast %c0_i32_211 : i32 to vector<8x256xi32>
    %419 = arith.addi %253, %418 : vector<8x256xi32>
    %c0_i32_212 = arith.constant 0 : i32
    %420 = vector.broadcast %c0_i32_212 : i32 to vector<8x256xi32>
    %421 = arith.cmpi sge, %419, %420 : vector<8x256xi32>
    %c0_i32_213 = arith.constant 0 : i32
    %422 = vector.broadcast %c0_i32_213 : i32 to vector<8x256xi32>
    %423 = arith.addi %253, %422 : vector<8x256xi32>
    %c16_i32_214 = arith.constant 16 : i32
    %424 = vector.broadcast %c16_i32_214 : i32 to vector<8x256xi32>
    %425 = arith.cmpi slt, %423, %424 : vector<8x256xi32>
    %426 = arith.andi %421, %425 : vector<8x256xi1>
    %c1_i32_215 = arith.constant 1 : i32
    %427 = vector.broadcast %c1_i32_215 : i32 to vector<8x256xi32>
    %428 = arith.addi %255, %427 : vector<8x256xi32>
    %c0_i32_216 = arith.constant 0 : i32
    %429 = vector.broadcast %c0_i32_216 : i32 to vector<8x256xi32>
    %430 = arith.cmpi sge, %428, %429 : vector<8x256xi32>
    %431 = arith.andi %426, %430 : vector<8x256xi1>
    %c1_i32_217 = arith.constant 1 : i32
    %432 = vector.broadcast %c1_i32_217 : i32 to vector<8x256xi32>
    %433 = arith.addi %255, %432 : vector<8x256xi32>
    %c16_i32_218 = arith.constant 16 : i32
    %434 = vector.broadcast %c16_i32_218 : i32 to vector<8x256xi32>
    %435 = arith.cmpi slt, %433, %434 : vector<8x256xi32>
    %436 = arith.andi %431, %435 : vector<8x256xi1>
    %cst_219 = arith.constant 0.000000e+00 : f32
    %437 = vector.broadcast %cst_219 : f32 to vector<8x256xf32>
    %438 = arith.select %436, %417, %437 : vector<8x256xi1>, vector<8x256xf32>
    %c56 = arith.constant 56 : index
    %c0_220 = arith.constant 0 : index
    %439 = vector.load %arg12[%c56, %c0_220] : memref<72x256xf32, #tpu.memory_space<vmem>>, vector<8x256xf32>
    tpu.vector_store %arg12[%c56, %c0_220], %438 {strides = array<i32>} : memref<72x256xf32, #tpu.memory_space<vmem>>, vector<8x256xf32>,
    %c0_221 = arith.constant 0 : index
    %c145_222 = arith.constant 145 : index
    %440 = vector.load %arg11[%c0_221, %c145_222] : memref<8x512xf32, #tpu.memory_space<vmem>>, vector<8x256xf32>
    %c1_i32_223 = arith.constant 1 : i32
    %441 = vector.broadcast %c1_i32_223 : i32 to vector<8x256xi32>
    %442 = arith.addi %253, %441 : vector<8x256xi32>
    %c0_i32_224 = arith.constant 0 : i32
    %443 = vector.broadcast %c0_i32_224 : i32 to vector<8x256xi32>
    %444 = arith.cmpi sge, %442, %443 : vector<8x256xi32>
    %c1_i32_225 = arith.constant 1 : i32
    %445 = vector.broadcast %c1_i32_225 : i32 to vector<8x256xi32>
    %446 = arith.addi %253, %445 : vector<8x256xi32>
    %c16_i32_226 = arith.constant 16 : i32
    %447 = vector.broadcast %c16_i32_226 : i32 to vector<8x256xi32>
    %448 = arith.cmpi slt, %446, %447 : vector<8x256xi32>
    %449 = arith.andi %444, %448 : vector<8x256xi1>
    %c1_i32_227 = arith.constant 1 : i32
    %450 = vector.broadcast %c1_i32_227 : i32 to vector<8x256xi32>
    %451 = arith.addi %255, %450 : vector<8x256xi32>
    %c0_i32_228 = arith.constant 0 : i32
    %452 = vector.broadcast %c0_i32_228 : i32 to vector<8x256xi32>
    %453 = arith.cmpi sge, %451, %452 : vector<8x256xi32>
    %454 = arith.andi %449, %453 : vector<8x256xi1>
    %c1_i32_229 = arith.constant 1 : i32
    %455 = vector.broadcast %c1_i32_229 : i32 to vector<8x256xi32>
    %456 = arith.addi %255, %455 : vector<8x256xi32>
    %c16_i32_230 = arith.constant 16 : i32
    %457 = vector.broadcast %c16_i32_230 : i32 to vector<8x256xi32>
    %458 = arith.cmpi slt, %456, %457 : vector<8x256xi32>
    %459 = arith.andi %454, %458 : vector<8x256xi1>
    %cst_231 = arith.constant 0.000000e+00 : f32
    %460 = vector.broadcast %cst_231 : f32 to vector<8x256xf32>
    %461 = arith.select %459, %440, %460 : vector<8x256xi1>, vector<8x256xf32>
    %c64 = arith.constant 64 : index
    %c0_232 = arith.constant 0 : index
    %462 = vector.load %arg12[%c64, %c0_232] : memref<72x256xf32, #tpu.memory_space<vmem>>, vector<8x256xf32>
    tpu.vector_store %arg12[%c64, %c0_232], %461 {strides = array<i32>} : memref<72x256xf32, #tpu.memory_space<vmem>>, vector<8x256xf32>,
    %c0_233 = arith.constant 0 : index
    %c0_234 = arith.constant 0 : index
    %463 = vector.load %arg6[%c0_233, %c0_234] : memref<8x72xf32, #tpu.memory_space<vmem>>, vector<8x72xf32>
    %c0_235 = arith.constant 0 : index
    %c0_236 = arith.constant 0 : index
    %464 = vector.load %arg12[%c0_235, %c0_236] : memref<72x256xf32, #tpu.memory_space<vmem>>, vector<72x256xf32>
    %cst_237 = arith.constant dense<0.000000e+00> : vector<8x256xf32>
    %465 = tpu.matmul %463, %464, %cst_237 {dimension_numbers = #tpu.dot_dimension_numbers<[1], [0], [0], [1], [0, 0, 1, 1], [], []>} : vector<8x72xf32>, vector<72x256xf32>, vector<8x256xf32> -> vector<8x256xf32>
    %c0_238 = arith.constant 0 : index
    %c0_239 = arith.constant 0 : index
    %466 = vector.load %arg7[%c0_238, %c0_239] : memref<8x1xf32, #tpu.memory_space<vmem>>, vector<8x1xf32>
    %467 = vector.broadcast %466 : vector<8x1xf32> to vector<8x256xf32>
    %468 = arith.addf %465, %467 : vector<8x256xf32>
    %469 = arith.negf %468 : vector<8x256xf32>
    %470 = math.exp %469 : vector<8x256xf32>
    %cst_240 = arith.constant 1.000000e+00 : f32
    %471 = vector.broadcast %cst_240 : f32 to vector<8x256xf32>
    %472 = arith.addf %471, %470 : vector<8x256xf32>
    %473 = arith.divf %471, %472 : vector<8x256xf32>
    %474 = arith.mulf %468, %473 : vector<8x256xf32>
    %c0_241 = arith.constant 0 : index
    %c0_242 = arith.constant 0 : index
    %c0_243 = arith.constant 0 : index
    %475 = vector.load %arg8[%c0_241, %c0_242, %c0_243] : memref<1x8x256xf32, #tpu.memory_space<vmem>>, vector<1x8x256xf32>
    %476 = vector.shape_cast %475 : vector<1x8x256xf32> to vector<8x256xf32>
    %477 = vector.shape_cast %474 : vector<8x256xf32> to vector<1x8x256xf32>
    tpu.vector_store %arg8[%c0_241, %c0_242, %c0_243], %477 {strides = array<i32>} : memref<1x8x256xf32, #tpu.memory_space<vmem>>, vector<1x8x256xf32>,
    return
  }
  func.func @transform_0(%arg0: i32) -> (i32, i32, i32) {
    %c0_i32 = arith.constant 0 : i32
    %c0_i32_0 = arith.constant 0 : i32
    %c0_i32_1 = arith.constant 0 : i32
    return %arg0, %c0_i32, %c0_i32_0 : i32, i32, i32
  }
  func.func @transform_1(%arg0: i32) -> (i32, i32) {
    %c0_i32 = arith.constant 0 : i32
    %c0_i32_0 = arith.constant 0 : i32
    %c0_i32_1 = arith.constant 0 : i32
    return %c0_i32, %c0_i32_0 : i32, i32
  }
  func.func @transform_2(%arg0: i32) -> (i32, i32) {
    %c0_i32 = arith.constant 0 : i32
    %c0_i32_0 = arith.constant 0 : i32
    %c0_i32_1 = arith.constant 0 : i32
    return %c0_i32, %c0_i32_0 : i32, i32
  }
  func.func @transform_3(%arg0: i32) -> (i32, i32) {
    %c0_i32 = arith.constant 0 : i32
    %c0_i32_0 = arith.constant 0 : i32
    %c0_i32_1 = arith.constant 0 : i32
    return %c0_i32, %c0_i32_0 : i32, i32
  }
  func.func @transform_4(%arg0: i32) -> (i32, i32) {
    %c0_i32 = arith.constant 0 : i32
    %c0_i32_0 = arith.constant 0 : i32
    %c0_i32_1 = arith.constant 0 : i32
    return %c0_i32, %c0_i32_0 : i32, i32
  }
  func.func @transform_5(%arg0: i32) -> (i32, i32) {
    %c0_i32 = arith.constant 0 : i32
    %c0_i32_0 = arith.constant 0 : i32
    %c0_i32_1 = arith.constant 0 : i32
    return %c0_i32, %c0_i32_0 : i32, i32
  }
  func.func @transform_6(%arg0: i32) -> (i32, i32) {
    %c0_i32 = arith.constant 0 : i32
    %c0_i32_0 = arith.constant 0 : i32
    %c0_i32_1 = arith.constant 0 : i32
    return %c0_i32, %c0_i32_0 : i32, i32
  }
  func.func @transform_7(%arg0: i32) -> (i32, i32, i32) {
    %c0_i32 = arith.constant 0 : i32
    %c0_i32_0 = arith.constant 0 : i32
    %c0_i32_1 = arith.constant 0 : i32
    return %arg0, %c0_i32, %c0_i32_0 : i32, i32, i32
  }
}

</mosaic_0001>

<bundles_post_ra>
// kernel: tpu_custom_call.1
= control target key start
LH: loop header
LB: loop body
LE: loop exit
PB: predicated region body
PF: predicated region fallthrough
CT: control target
= control target key end

     0   :  { %12 = vsyncpa [#allocation7], 0  ;;  %s2038_s0 = inlined_call_operand.vmem [shape: f32[2,4,256], index: 0, kind: input, shape index: {}]   ;;  %s2039_s1 = inlined_call_operand.hbm [shape: f32[4,256], index: 1, kind: input, shape index: {}]   ;;  %s2040_s2 = inlined_call_operand.hbm [shape: f32[4,256], index: 2, kind: input, shape index: {}]   ;;  %s2041_s3 = inlined_call_operand.hbm [shape: f32[8,36], index: 3, kind: input, shape index: {}]   ;;  %s2042_s4 = inlined_call_operand.vmem [shape: f32[8,1], index: 4, kind: input, shape index: {}]   ;;  %s2043_s5 = inlined_call_operand.vmem [shape: f32[8,72], index: 5, kind: input, shape index: {}]   ;;  %s2044_s6 = inlined_call_operand.vmem [shape: f32[8,1], index: 6, kind: input, shape index: {}]   ;;  %s2045_s7 = inlined_call_operand.hbm [shape: f32[2,8,256], index: 7, kind: output, shape index: {}]  }
   0x1   :  { %13 = vsyncpa [#allocation10], 0 }
   0x2   :  { %14 = vsyncpa [#allocation8], 0 }
   0x3   :  { %16 = vsyncpa [#allocation8 + $0x1], 0  ;;  %s1497_s24 = smov 0   ;;  %s1499_s25 = smov 0  }
   0x4   :  { %s1501_s26 = smov 0   ;;  %s1503_s27 = smov 0  }
   0x5 LB: > { %s1518_s28 = sadd.s32 4294967295, %s1441_s27   ;;  %s1141_s29 = sadd.s32 4294967294, %s1441_s27   ;;  %s1441_s27 = sphi %s1503_s27, %s2187_s27   ;;  %s1437_s26 = sphi %s1501_s26, %s2186_s26   ;;  %s1433_s25 = sphi %s1499_s25, %s2185_s25   ;;  %s1429_s24 = sphi %s1497_s24, %s2184_s24  }
   0x6   : > { %s1522_s30 = sadd.s32 1, %s1441_s27   ;;  %s181_s8 = sadd.s32 1, %s1437_s26 }
   0x7   : > { %s178_s9 = ssub.s32 %s1441_s27, %s1522_s30  ;;  %p191_p0 = scmp.ne.s32.totalorder %s1437_s26, %s1433_s25 }
   0x8   : > { %p179_p1 = scmp.eq.s32.totalorder %s178_s9, 0  ;;  %p192_p2 = scmp.eq.s32.totalorder %s1518_s28, 1 }
   0x9   : > { %p197_p3 = scmp.ne.s32.totalorder %s1433_s25, %s1429_s24  ;;  %p198_p4 = scmp.eq.s32.totalorder %s1141_s29, 1 }
   0xa   : > { %s1533_s10 = scalar_select %p179_p1, %s1437_s26, %s181_s8  }
   0xb   : > { %p1535_p5 = por %p192_p2, %p191_p0  ;;  %p1539_p6 = por %p198_p4, %p197_p3 }
   0xc   : > { %p1142_p7 = scmp.ge.s32.totalorder %s1441_s27, 1  ;;  %p205_p8 = scmp.lt.s32.totalorder %s1441_s27, 3 }
   0xd   : > { %s2079_s11 = scalar_select %p1535_p5, 1, 0 }
   0xe   : > { %s2080_s12 = scalar_select %p1539_p6, 1, 0 }
   0xf   : > { %p2046_p9 = scmp.eq.s32.totalorder %s1518_s28, 0  ;;  %p1546_p10 = pnand %p1142_p7, %p205_p8 }
  0x10   : > { %s1443_s14 = smov [#allocation9]   ;;  %s1444_s16 = smov [#allocation6]  }
  0x11   : > { %s2081_s13 = scalar_select %p1546_p10, 1, 0 }
  0x12   : > { %s229_s15 = sshll.u32 %s1443_s14, 4  ;;  %p1207_p11 = pneg %p1546_p10  ;;  %s230_s15 = int_to_ptr.vmem [resolvable:$true] %s229_s15 }
  0x13   : > { %s218_s17 = sshll.u32 %s1444_s16, 4  ;;  %s1445_s19 = smov [#allocation11]   ;;  %s219_s17 = int_to_ptr.vmem [resolvable:$true] %s218_s17 }
  0x14   : > { %p1554_p12 = pnand %p2046_p9, %p1207_p11  ;;  %s240_s20 = sshll.u32 %s1445_s19, 4  ;;  %s1558_s20 = int_to_ptr.vmem [resolvable:$true] %s240_s20 }
  0x15   : > { %s1306_s21 = scalar_lea.vmem %s230_s15, 128  ;;  %p1314_p3 = scmp.lt.s32.totalorder %s230_s15, %s230_s15 }
  0x16   : > { %p1297_p13 = pneg %p1554_p12  ;;  %p1307_p0 = scmp.ne.s32.totalorder %s230_s15, %s1306_s21 }
  0x17   : > { %p1315_p4 = scmp.lt.s32.totalorder %s1306_s21, %s1306_s21 }
  0x18   : > { %p1309_p1 = pnand %p1307_p0, %p1297_p13 }
  0x19   : > { %p1316_p7 = por %p1315_p4, %p1314_p3 }
  0x1a   : > { %p1310_p2 = pneg %p1309_p1 }
  0x1c   : > { %p1317_p8 = pnand %p1316_p7, %p1310_p2 }
  0x1e   : > { %1320 = shalt.err (!%p1317_p8)
}
  0x1f   : > { %1213 = dma.hbm_to_vmem [thread:$0]  (!%p1554_p12), %s2040_s2, 128, %s230_s15, [#allocation10]  }
  0x20   : > { %s1332_s29 = scalar_lea.vmem %s219_s17, 128  ;;  %p1340_p0 = scmp.lt.s32.totalorder %s219_s17, %s219_s17 }
  0x21   : > { %p1333_p11 = scmp.ne.s32.totalorder %s219_s17, %s1332_s29  ;;  %p1341_p1 = scmp.lt.s32.totalorder %s1332_s29, %s1332_s29 }
  0x23   : > { %p1335_p9 = pnand %p1333_p11, %p1297_p13  ;;  %p1342_p5 = por %p1341_p1, %p1340_p0 }
  0x25   : > { %p1336_p6 = pneg %p1335_p9 }
  0x27   : > { %p1343_p10 = pnand %p1342_p5, %p1336_p6 }
  0x29   : > { %1346 = shalt.err (!%p1343_p10)
}
  0x2a   : > { %1210 = dma.hbm_to_vmem [thread:$0]  (!%p1554_p12), %s2039_s1, 128, %s219_s17, [#allocation7]  }
  0x2b   : > { %s1358_s14 = scalar_lea.vmem %s1558_s20, 128  ;;  %p1366_p4 = scmp.lt.s32.totalorder %s1558_s20, %s1558_s20 }
  0x2c   : > { %p1359_p2 = scmp.ne.s32.totalorder %s1558_s20, %s1358_s14  ;;  %p1367_p5 = scmp.lt.s32.totalorder %s1358_s14, %s1358_s14 }
  0x2e   : > { %p1361_p9 = pnand %p1359_p2, %p1297_p13  ;;  %p1368_p6 = por %p1367_p5, %p1366_p4 }
  0x30   : > { %p1362_p3 = pneg %p1361_p9 }
  0x32   : > { %p1369_p10 = pnand %p1368_p6, %p1362_p3 }
  0x34   : > { %1372 = shalt.err (!%p1369_p10)
}
  0x35   : > { %1216 = dma.hbm_to_vmem [thread:$0]  (!%p1554_p12), %s2041_s3, 128, %s1558_s20, [#allocation10]  }
  0x36   : > { %p2083_p7 = scmp.ne.s32.totalorder %s2081_s13, 0 }
  0x37   : > { %p2084_p8 = scmp.eq.s32.totalorder (!%p2083_p7), %s1518_s28, 0 }
  0x38   : > { %270 = sbr.rel (%p2083_p7) target bundleno = 1359 (0x54f), region = 48 }
  0x3d   : > { %1416 = dma.done.wait (%p2084_p8), [#allocation7], 128   ;;  %p2085_p13 = pmov %p2084_p8 }
  0x3e   : > { %p2086_p11 = pmov %p2084_p8 }
  0x3f   : > { %1418 = vsyncadd (%p2085_p13), [#allocation7], 4294967168 }
  0x40   : > { %1420 = dma.done.wait (%p2086_p11), [#allocation10], 256   ;;  %p2087_p0 = pmov %p2084_p8 }
  0x41   : > { %p310_p1 = scmp.lt.s32.totalorder %s1518_s28, 1  ;;  %vm2051_vm0 = vcmask 1043456   ;;  %v587_v19 = vld [vmem:[#allocation2 + $0xc] sm:$0xf]  ;;  %s1446_s23 = smov 112   ;;  %v367_v32 = vlaneseq  ;;  %v362_v38 = vld [vmem:[#allocation6] sm:$0xff] }
  0x42   : > { %1422 = vsyncadd (%p2087_p0), [#allocation10], 4294967040  ;;  %599 = vrot.lane.b32.xlu1 %v587_v19, %s1446_s23  ;;  %v617_v22 = vld [vmem:[#allocation2 + $0xc] sm:$0xf]  ;;  %s1447_s29 = smov 111   ;;  %s1448_s8 = smov 127  }
  0x43   : > { %s311_s17 = scalar_select %p310_p1, %s1518_s28, 1  ;;  %v527_v25 = vld [vmem:[#allocation2 + $0xc] sm:$0xf]  ;;  %v1614_v33 = vand.u32 127, %v367_v32  ;;  %v2088_v43 = vmov 0  ;;  %v2090_v44 = vmov 0 }
  0x44   : > { %v557_v26 = vld [vmem:[#allocation2 + $0xc] sm:$0xf]  ;;  %s1449_s9 = smov 113   ;;  %s1451_s19 = smov 16   ;;  %v1454_v54 = vmov 0.0   ;;  %v1455_v55 = vmov 0  }
  0x45   : > { %s1167_s18 = sshll.u32 %s311_s17, 3  ;;  %v1617_v34 = vadd.s32 128, %v1614_v33  ;;  %v1620_v35 = vshra.s32 %v1614_v33, 4  ;;  %v364_v40 = vld [vmem:[#allocation9] sm:$0xff]  ;;  %s1452_s13 = smov 15   ;;  %731 = vmatprep.mubr.f32.mxu0 %v1454_v54  ;;  %1013 = vmatprep.mubr.f32.mxu1 %v1454_v54  ;;  %v651_v56 = vld [vmem:[%s2042_s4] sm:$0xff] }
  0x46   : > { %s314_s20 = scalar_lea.vmem %s2038_s0, %s1167_s18  ;;  %629 = vrot.lane.b32.xlu1 %v617_v22, %s1447_s29  ;;  %s1450_s18 = smov 1   ;;  %1274 = vset.pattern.permute.xlu0 %v1455_v55  ;;  %v370_v62 = vand.u32 15, %v1614_v33  ;;  %v2098_v22 = vmov 0 }
  0x47   : > { %v315_v0 = vld [vmem:[%s314_s20] sm:$0xff]  ;;  %v1623_v36 = vshra.s32 %v1617_v34, 4  ;;  %vm2053_vm1 = vcmp.ge.s32.totalorder %v1620_v35, 0  ;;  %vm2050_vm2 = vcmp.lt.s32.totalorder %v1620_v35, 16  ;;  %s1453_s20 = smov 17   ;;  %1273 = vset.pattern.permute.xlu1 %v1455_v55  ;;  %v371_v63 = vand.u32 15, %v1617_v34 }
  0x48   : > { %v317_v1 = vcombine.high %v315_v0, %v315_v0  ;;  %v320_v2 = vsel %vm2051_vm0, %v315_v0, 0.0  ;;  %vm1633_vm5 = vmand %vm2053_vm1, %vm2050_vm2  ;;  %v1740_v19 = vadd.s32 4294967295, %v370_v62  ;;  %v2131_v55 = vmov 0  ;;  %p2182_p2 = scmp.ne.s32.totalorder %s2079_s11, 0 }
  0x49   : > { %vm2052_vm3 = vcmp.ge.s32.totalorder %v1623_v36, 0  ;;  %vm2049_vm4 = vcmp.lt.s32.totalorder %v1623_v36, 16  ;;  %v2089_v43 = vsel %vm1633_vm5, 4294967295, %v2088_v43 }
  0x4a   : > { %v321_v3 = vsel %vm2051_vm0, %v317_v1, 0.0  ;;  %539 = vrot.lane.b32.xlu1 %v527_v25, %s1448_s8  ;;  %vm1641_vm6 = vmand %vm2052_vm3, %vm2049_vm4  ;;  %v2100_v25 = vmov 0 }
  0x4b   : > { %v322_v4 = vadd.f32 %v321_v3, %v320_v2  ;;  %v2091_v44 = vsel %vm1641_vm6, 4294967295, %v2090_v44  ;;  %v450_v2 = vadd.s32 1, %v370_v62  ;;  %v1685_v3 = vadd.s32 1, %v1620_v35 }
  0x4d   : > { %323 = vadd.xlane.f32.xlu0 %v322_v4  ;;  %v1687_v4 = vadd.s32 1, %v371_v63  ;;  %vm2059_vm7 = vcmp.lt.s32.totalorder %v450_v2, 16  ;;  %vm2055_vm8 = vcmp.ge.s32.totalorder %v1685_v3, 0  ;;  %vm2066_vm11 = vcmp.lt.s32.totalorder %v1685_v3, 16 }
  0x4e   : > { %vm618_vm12 = vmand %vm2059_vm7, %vm2055_vm8 }
  0x4f   : > { %vm2058_vm9 = vcmp.lt.s32.totalorder %v1687_v4, 16  ;;  %vm1716_vm2 = vmand %vm618_vm12, %vm2066_vm11 }
  0xb4   : > { %v1672_v57 = vpop.permute.xlu1 %599 }
  0xb8   : > { %v630_v58 = vpop.permute.xlu1 %629 }
  0xbc   : > { %v1674_v59 = vpop.permute.xlu1 %539 }
  0xd6   : > { %v324_v5 = vpop.xlane.xlu0 %323 }
  0xd7   : > { %v325_v6 = vrot.slane %v324_v5, 4 }
  0xd9   : > { %v326_v7 = vadd.f32 %v325_v6, %v324_v5  ;;  %v1690_v5 = vadd.s32 1, %v1623_v36 }
  0xdb   : > { %v327_v8 = vrot.slane %v326_v7, 2  ;;  %vm2054_vm10 = vcmp.ge.s32.totalorder %v1690_v5, 0  ;;  %vm2056_vm13 = vcmp.lt.s32.totalorder %v1690_v5, 16 }
  0xdc   : > { %vm619_vm14 = vmand %vm2058_vm9, %vm2054_vm10 }
  0xdd   : > { %v328_v9 = vadd.f32 %v327_v8, %v326_v7  ;;  %v384_v8 = vadd.s32 4294967295, %v1620_v35  ;;  %vm1722_vm3 = vmand %vm619_vm14, %vm2056_vm13  ;;  %vm2063_vm14 = vcmask 130048  }
  0xdf   : > { %v329_v10 = vrot.slane %v328_v9, 1  ;;  %vm2062_vm15 = vcmp.ge.s32.totalorder %v384_v8, 0  ;;  %vm2064_vm4 = vcmp.lt.s32.totalorder %v384_v8, 16 }
  0xe0   : > { %vm1730_vm8 = vmand %vm2062_vm15, %vm2064_vm4 }
  0xe1   : > { %v330_v11 = vadd.f32 %v329_v10, %v328_v9  ;;  %vm458_vm13 = vmand %vm2059_vm7, %vm2062_vm15 }
  0xe2   : > { %vm1765_vm7 = vmand %vm458_vm13, %vm2064_vm4  ;;  %vm2107_vm13 = vcmp.lt.s32.totalorder %v1690_v5, 16 }
  0xe3   : > { %1187 = vpush %v330_v11  ;;  %v1712_v11 = vadd.s32 4294967295, %v1623_v36 }
  0xe5   : > { %vm2060_vm1 = vcmp.ge.s32.totalorder %v1712_v11, 0  ;;  %vm2061_vm10 = vcmp.lt.s32.totalorder %v1712_v11, 16 }
  0xe6   : > { %vm459_vm12 = vmand %vm2058_vm9, %vm2060_vm1 }
  0xe7   : > { %vm1758_vm9 = vmand %vm459_vm12, %vm2061_vm10  ;;  %vm2111_vm12 = vcmp.ge.s32.totalorder %v384_v8, 0 }
  0xe8   : > { %v2101_v25 = vsel %vm1758_vm9, 4294967295, %v2100_v25 }
 0x114   : > { %s1188_s21 = spop %1187 }
 0x115   : > { %s334_s22 = smul.f32 0.0009765625, %s1188_s21 }
 0x117   : > { %v335_v12 = vstv %s334_s22 }
 0x118   : > { %v336_v13 = vsub.f32 %v315_v0, %v335_v12 }
 0x11a   : > { %v337_v14 = vmul.f32 %v336_v13, %v336_v13 }
 0x11c   : > { %v339_v15 = vcombine.high %v337_v14, %v337_v14  ;;  %v341_v16 = vsel %vm2051_vm0, %v337_v14, 0.0 }
 0x11e   : > { %v342_v17 = vsel %vm2051_vm0, %v339_v15, 0.0  ;;  %vm2057_vm0 = vcmask 908288  }
 0x11f   : > { %v343_v18 = vadd.f32 %v342_v17, %v341_v16  ;;  %v2096_v16 = vmov 0 }
 0x120   : > { %v2097_v16 = vsel %vm1730_vm8, 4294967295, %v2096_v16 }
 0x121   : > { %344 = vadd.xlane.f32.xlu0 %v343_v18 }
 0x137   : > { %575 = vrot.lane.b32.xlu0 %v557_v26, %s1449_s9 }
 0x1aa   : > { %v345_v20 = vpop.xlane.xlu0 %344 }
 0x1ab   : > { %v346_v21 = vrot.slane %v345_v20, 4 }
 0x1ad   : > { %v347_v23 = vadd.f32 %v346_v21, %v345_v20 }
 0x1ae   : > { %v1676_v60 = vpop.permute.xlu0 %575 }
 0x1af   : > { %v348_v24 = vrot.slane %v347_v23, 2 }
 0x1b1   : > { %v349_v27 = vadd.f32 %v348_v24, %v347_v23 }
 0x1b3   : > { %v350_v28 = vrot.slane %v349_v27, 1 }
 0x1b5   : > { %v351_v29 = vadd.f32 %v350_v28, %v349_v27  ;;  %v2102_v28 = vmov 0 }
 0x1b6   : > { %v2103_v28 = vsel %vm1765_vm7, 4294967295, %v2102_v28 }
 0x1b7   : > { %1189 = vpush %v351_v29 }
 0x1e8   : > { %s1190_s14 = spop %1189 }
 0x1e9   : > { %s355_s15 = smul.f32 0.0009765625, %s1190_s14  ;;  %s307_s14 = sand.u32 1, %s1433_s25  }
 0x1ea   : > { %s1037_s21 = scalar_lea.sflag [#allocation8], %s307_s14 }
 0x1eb   : > { %s356_s16 = sadd.f32 1e-05, %s355_s15  ;;  %s1151_s15 = sshll.u32 %s307_s14, 4 }
 0x1ed   : > { %v357_v30 = vstv %s356_s16  ;;  %s1168_s16 = sshll.u32 %s1518_s28, 8 }
 0x1ee   : > { %1277 = vrsqrt.f32 %v357_v30 }
 0x1fb   : > { %v1278_v31 = vpop.eup %1277 }
 0x1fc   : > { %1191 = vpush %v1278_v31 }
 0x22d   : > { %s1192_s17 = spop %1191 }
 0x22e   : > { %v360_v37 = vstv %s1192_s17  ;;  %s309_s17 = scalar_lea.vmem [#allocation12], %s1151_s15 }
 0x22f   : > { %v361_v39 = vmul.f32 %v360_v37, %v336_v13 }
 0x231   : > { %v363_v41 = vmul.f32 %v362_v38, %v361_v39 }
 0x233   : > { %v365_v42 = vadd.f32 %v364_v40, %v363_v41  ;;  %v1797_v40 = vadd.s32 4294967295, %v371_v63 }
 0x235   : > { %366 = vst [vmem:[#allocation2 + $0x4] sm:$0xff] %v365_v42  ;;  %595 = vrot.lane.b32.xlu1 %v365_v42, %s1446_s23  ;;  %v594_v45 = vcombine.high %v365_v42, %v365_v42  ;;  %571 = vrot.lane.b32.xlu0 %v365_v42, %s1449_s9  ;;  %v522_v46 = vsel %vm1633_vm5, %v365_v42, 0.0 }
 0x236   : > { %524 = vst [vmem:[#allocation3 + $0x48] sm:$0xf] %v522_v46 }
 0x237   : > { %v523_v47 = vsel %vm1641_vm6, %v594_v45, 0.0  ;;  %vm2146_vm6 = vcmp.ge.s32.totalorder %v1797_v40, 0 }
 0x238   : > { %525 = vst [vmem:[#allocation3 + $0x28] sm:$0xf] %v523_v47 }
 0x239   : > { %625 = vrot.lane.b32.xlu1 %v365_v42, %s1447_s29 }
 0x23c   : > { %v481_v48 = vld [vmem:[#allocation2 + $0x8] sm:$0xf]  ;;  %v412_v49 = vld [vmem:[#allocation2] sm:$0xff] }
 0x23d   : > { %497 = vrot.lane.b32.xlu0 %v481_v48, %s1450_s18  ;;  %535 = vrot.lane.b32.xlu1 %v365_v42, %s1448_s8  ;;  %v413_v50 = vld [vmem:[#allocation2 + $0x8] sm:$0xf]  ;;  %v426_v51 = vcombine.high %v412_v49, %v412_v49 }
 0x23e   : > { %v449_v52 = vld [vmem:[#allocation2 + $0x8] sm:$0xf] }
 0x23f   : > { %v375_v53 = vld [vmem:[#allocation2 + $0x8] sm:$0xf] }
 0x241   : > { %427 = vrot.lane.b32.xlu0 %v412_v49, %s1451_s19  ;;  %493 = vrot.lane.b32.xlu1 %v412_v49, %s1450_s18 }
 0x245   : > { %627 = vrot.lane.b32.xlu0 %v594_v45, %s1447_s29  ;;  %431 = vrot.lane.b32.xlu1 %v413_v50, %s1451_s19 }
 0x249   : > { %429 = vrot.lane.b32.xlu0 %v426_v51, %s1451_s19  ;;  %469 = vrot.lane.b32.xlu1 %v449_v52, %s1452_s13  ;;  %v2126_v52 = vmov 0 }
 0x24d   : > { %467 = vrot.lane.b32.xlu0 %v426_v51, %s1452_s13  ;;  %465 = vrot.lane.b32.xlu1 %v412_v49, %s1452_s13 }
 0x251   : > { %399 = vrot.lane.b32.xlu0 %v426_v51, %s1453_s20  ;;  %597 = vrot.lane.b32.xlu1 %v594_v45, %s1446_s23 }
 0x255   : > { %397 = vrot.lane.b32.xlu0 %v412_v49, %s1453_s20  ;;  %537 = vrot.lane.b32.xlu1 %v594_v45, %s1448_s8  ;;  %v2122_v49 = vmov 0 }
 0x259   : > { %573 = vrot.lane.b32.xlu1 %v594_v45, %s1449_s9 }
 0x25d   : > { %495 = vrot.lane.b32.xlu1 %v426_v51, %s1450_s18 }
 0x261   : > { %401 = vrot.lane.b32.xlu1 %v375_v53, %s1453_s20 }
 0x265   : > { %654 = vperm.xlu1 %1273, %v651_v56  }
 0x2a7   : > { %v1678_v61 = vpop.permute.xlu1 %595  ;;  %v1682_v0 = vpop.permute.xlu0 %571 }
 0x2ab   : > { %v626_v1 = vpop.permute.xlu1 %625 }
 0x2af   : > { %v1692_v6 = vpop.permute.xlu0 %497  ;;  %v1694_v7 = vpop.permute.xlu1 %535 }
 0x2b3   : > { %v428_v9 = vpop.permute.xlu0 %427  ;;  %v1704_v10 = vpop.permute.xlu1 %493 }
 0x2b7   : > { %v628_v14 = vpop.permute.xlu0 %627  ;;  %v432_v15 = vpop.permute.xlu1 %431 }
 0x2b8   : > { %v632_v17 = vsel %vm2057_vm0, %v626_v1, %v628_v14  ;;  %v633_v18 = vsel %vm2057_vm0, %v628_v14, %v630_v58  ;;  %vm1752_vm0 = vmand %vm2060_vm1, %vm2061_vm10  ;;  %vm2069_vm1 = vcmp.ge.s32.totalorder %v1740_v19, 0  ;;  %vm2104_vm10 = vcmp.ge.s32.totalorder %v1685_v3, 0 }
 0x2b9   : > { %v636_v20 = vsel %vm1716_vm2, %v632_v17, 0.0  ;;  %v637_v21 = vsel %vm1722_vm3, %v633_v18, 0.0  ;;  %v2099_v22 = vsel %vm1752_vm0, 4294967295, %v2098_v22  ;;  %vm1778_vm15 = vmand %vm2104_vm10, %vm2066_vm11  ;;  %vm2114_vm10 = vcmask 121856  }
 0x2ba   : > { %638 = vst [vmem:[#allocation3 + $0x40] sm:$0xf] %v636_v20  ;;  %639 = vst [vmem:[#allocation3 + $0x38] sm:$0xf] %v637_v21 }
 0x2bb   : > { %v430_v23 = vpop.permute.xlu0 %429  ;;  %v470_v24 = vpop.permute.xlu1 %469  ;;  %vm2115_vm11 = vmmov %vm2114_vm10 }
 0x2bc   : > { %v434_v26 = vsel %vm2063_vm14, %v428_v9, %v430_v23  ;;  %v435_v27 = vsel %vm2063_vm14, %v430_v23, %v432_v15  ;;  %vm2108_vm14 = vcmp.ge.s32.totalorder %v1690_v5, 0 }
 0x2bd   : > { %v438_v29 = vsel %vm1730_vm8, %v434_v26, 0.0  ;;  %v439_v30 = vsel %vm1752_vm0, %v435_v27, 0.0  ;;  %vm1786_vm4 = vmand %vm2108_vm14, %vm2107_vm13  ;;  %vm2116_vm13 = vcmp.ge.s32.totalorder %v1620_v35, 0  ;;  %vm2117_vm0 = vcmp.lt.s32.totalorder %v450_v2, 16 }
 0x2be   : > { %v442_v32 = vrot.slane %v438_v29, 4  ;;  %v443_v33 = vrot.slane %v439_v30, 4  ;;  %vm1793_vm8 = vmand %vm2069_vm1, %vm2111_vm12  ;;  %vm2118_vm12 = vcmp.ge.s32.totalorder %v1623_v36, 0  ;;  %vm2119_vm1 = vcmp.lt.s32.totalorder %v1687_v4, 16 }
 0x2bf   : > { %v468_v37 = vpop.permute.xlu0 %467  ;;  %v466_v38 = vpop.permute.xlu1 %465  ;;  %vm528_vm5 = vmand %vm2117_vm0, %vm2116_vm13  ;;  %vm2121_vm14 = vcmp.lt.s32.totalorder %v384_v8, 16 }
 0x2c0   : > { %446 = vst [vmem:[#allocation3 + $0x30] sm:$0xf0] %v442_v32  ;;  %447 = vst [vmem:[#allocation3] sm:$0xf0] %v443_v33  ;;  %v473_v41 = vsel %vm2114_vm10, %v468_v37, %v470_v24  ;;  %v472_v42 = vsel %vm2115_vm11, %v466_v38, %v468_v37  ;;  %vm2120_vm11 = vcmask 1043456  }
 0x2c1   : > { %v477_v45 = vsel %vm1758_vm9, %v473_v41, 0.0  ;;  %v650_v46 = vld [vmem:[#allocation3 + $0x38] sm:$0xf]  ;;  %v476_v47 = vsel %vm1765_vm7, %v472_v42, 0.0  ;;  %v649_v48 = vld [vmem:[#allocation3 + $0x40] sm:$0xf]  ;;  %vm529_vm10 = vmand %vm2119_vm1, %vm2118_vm12 }
 0x2c2   : > { %479 = vst [vmem:[#allocation3 + $0x10] sm:$0xf] %v477_v45  ;;  %1154 = vmatprep.subr.msk.mxu0 %vm2120_vm11, %v650_v46  ;;  %478 = vst [vmem:[#allocation3 + $0x18] sm:$0xf] %v476_v47  ;;  %vm2125_vm7 = vcmp.lt.s32.totalorder %v1620_v35, 16  ;;  %vm2128_vm12 = vcmask 916480  }
 0x2c3   : > { %vm1816_vm0 = vmand %vm1793_vm8, %vm2121_vm14  ;;  %v400_v50 = vpop.permute.xlu0 %399  ;;  %v598_v51 = vpop.permute.xlu1 %597  ;;  %vm2130_vm14 = vcmp.lt.s32.totalorder %v1623_v36, 16  ;;  %v640_v41 = vld [vmem:[#allocation11] sm:$0xff]  ;;  %v902_v45 = vld [vmem:[#allocation4 + $0x18] sm:$0xff] }
 0x2c4   : > { %v2123_v49 = vsel %vm1816_vm0, 4294967295, %v2122_v49  ;;  %vm2124_vm13 = vmmov %vm2120_vm11  ;;  %v602_v53 = vsel %vm2128_vm12, %v1678_v61, %v598_v51  ;;  %910 = vrot.lane.b32.xlu1 %v902_v45, %s1447_s29  ;;  %890 = vrot.lane.b32.xlu0 %v902_v45, %s1446_s23  ;;  %v794_v46 = vld [vmem:[#allocation4 + $0x8] sm:$0xff] }
 0x2c5   : > { %1155 = vmatpush1.msk.msra.mxu0 %vm2124_vm13, %v649_v48  ;;  %vm1823_vm9 = vmand %vm528_vm5, %vm2125_vm7  ;;  %v606_v56 = vsel %vm1778_vm15, %v602_v53, 0.0  ;;  %vm2073_vm5 = vcmask 138240   ;;  %vm2072_vm7 = vcmask 1039360   ;;  %vm2133_vm13 = vcmp.ge.s32.totalorder %v1685_v3, 0 }
 0x2c6   : > { %v2127_v52 = vsel %vm1823_vm9, 4294967295, %v2126_v52  ;;  %vm2129_vm8 = vmmov %vm2128_vm12  ;;  %vm2134_vm12 = vcmp.ge.s32.totalorder %v1740_v19, 0 }
 0x2c7   : > { %v603_v54 = vsel %vm2129_vm8, %v598_v51, %v1672_v57  ;;  %vm1834_vm11 = vmand %vm529_vm10, %vm2130_vm14  ;;  %v610_v57 = vrot.slane %v606_v56, 4  ;;  %vm2135_vm10 = vcmp.ge.s32.totalorder %v1690_v5, 0  ;;  %vm2136_vm8 = vcmp.ge.s32.totalorder %v1797_v40, 0  ;;  %v398_v62 = vpop.permute.xlu0 %397  ;;  %v538_v63 = vpop.permute.xlu1 %537 }
 0x2c8   : > { %v2132_v55 = vsel %vm1834_vm11, 4294967295, %v2131_v55  ;;  %v607_v58 = vsel %vm1786_vm4, %v603_v54, 0.0  ;;  %vm562_vm1 = vmand %vm2134_vm12, %vm2133_vm13  ;;  %v404_v1 = vsel %vm2073_vm5, %v398_v62, %v400_v50  ;;  %v542_v2 = vsel %vm2072_vm7, %v1694_v7, %v538_v63  ;;  %870 = vrot.lane.b32.xlu1 %v902_v45, %s1449_s9  ;;  %850 = vrot.lane.b32.xlu0 %v902_v45, %s1448_s8 }
 0x2c9   : > { %v611_v61 = vrot.slane %v607_v58, 4  ;;  %vm563_vm14 = vmand %vm2136_vm8, %vm2135_vm10  ;;  %614 = vst [vmem:[#allocation3 + $0x8] sm:$0xf0] %v610_v57  ;;  %v543_v4 = vsel %vm2072_vm7, %v538_v63, %v1674_v59  ;;  %vm2137_vm13 = vcmp.lt.s32.totalorder %v1685_v3, 16  ;;  %v408_v9 = vsel %vm1816_vm0, %v404_v1, 0.0 }
 0x2ca   : > { %vm1857_vm12 = vmand %vm562_vm1, %vm2137_vm13  ;;  %v546_v14 = vsel %vm1823_vm9, %v542_v2, 0.0  ;;  %v547_v15 = vsel %vm1834_vm11, %v543_v4, 0.0  ;;  %vm2140_vm10 = vcmp.lt.s32.totalorder %v1690_v5, 16  ;;  %vm2077_vm7 = vcmask 924672   ;;  %410 = vst [vmem:[#allocation3 + $0x30] sm:$0xf] %v408_v9 }
 0x2cb   : > { %615 = vst [vmem:[#allocation3 + $0x20] sm:$0xf0] %v611_v61  ;;  %vm1869_vm8 = vmand %vm563_vm14, %vm2140_vm10  ;;  %v550_v59 = vrot.slane %v546_v14, 4  ;;  %v551_v3 = vrot.slane %v547_v15, 4  ;;  %vm2143_vm1 = vcmp.ge.s32.totalorder %v1620_v35, 0  ;;  %vm2144_vm13 = vcmp.ge.s32.totalorder %v1740_v19, 0  ;;  %v574_v17 = vpop.permute.xlu1 %573 }
 0x2cc   : > { %vm484_vm5 = vmand %vm2144_vm13, %vm2143_vm1  ;;  %vm2145_vm0 = vcmp.ge.s32.totalorder %v1623_v36, 0  ;;  %v578_v5 = vsel %vm2077_vm7, %v1682_v0, %v574_v17  ;;  %v579_v18 = vsel %vm2077_vm7, %v574_v17, %v1676_v60  ;;  %vm2147_vm14 = vcmp.lt.s32.totalorder %v1620_v35, 16  ;;  %800 = vrot.lane.b32.xlu1 %v794_v46, %s1452_s13  ;;  %820 = vrot.lane.b32.xlu0 %v794_v46, %s1450_s18  ;;  %v939_v9 = vld [vmem:[%s2044_s6] sm:$0xff] }
 0x2cd   : > { %vm485_vm9 = vmand %vm2146_vm6, %vm2145_vm0  ;;  %554 = vst [vmem:[#allocation3 + $0x48] sm:$0xf0] %v550_v59  ;;  %v582_v20 = vsel %vm1857_vm12, %v578_v5, 0.0  ;;  %v583_v19 = vsel %vm1869_vm8, %v579_v18, 0.0  ;;  %vm499_vm6 = vcmask 7168   ;;  %vm2150_vm0 = vcmp.lt.s32.totalorder %v1623_v36, 16 }
 0x2ce   : > { %555 = vst [vmem:[#allocation3 + $0x28] sm:$0xf0] %v551_v3  ;;  %vm1891_vm10 = vmand %vm484_vm5, %vm2147_vm14  ;;  %vm2153_vm13 = vcmp.ge.s32.totalorder %v1712_v11, 0  ;;  %vm2154_vm7 = vcmp.ge.s32.totalorder %v1797_v40, 0  ;;  %vm2159_vm14 = vcmask 908288  }
 0x2cf   : > { %584 = vst [vmem:[#allocation3 + $0x8] sm:$0xf] %v582_v20  ;;  %585 = vst [vmem:[#allocation3 + $0x20] sm:$0xf] %v583_v19  ;;  %v496_v60 = vpop.permute.xlu1 %495 }
 0x2d0   : > { %vm1897_vm1 = vmand %vm485_vm9, %vm2150_vm0  ;;  %v500_v35 = vsel %vm499_vm6, %v1704_v10, %v496_v60  ;;  %v501_v23 = vsel %vm499_vm6, %v496_v60, %v1692_v6  ;;  %vm2155_vm9 = vcmp.lt.s32.totalorder %v1712_v11, 16 }
 0x2d1   : > { %vm389_vm11 = vmand %vm2154_vm7, %vm2153_vm13  ;;  %v504_v24 = vsel %vm1891_vm10, %v500_v35, 0.0  ;;  %v505_v36 = vsel %vm1897_vm1, %v501_v23, 0.0  ;;  %vm2158_vm7 = vcmask 138240   ;;  %v641_v42 = vld [vmem:[#allocation3 + $0x30] sm:$0xff]  ;;  %vm2161_vm13 = vcmask 916480  }
 0x2d2   : > { %v508_v26 = vrot.slane %v504_v24, 4  ;;  %v509_v27 = vrot.slane %v505_v36, 4  ;;  %vm1915_vm5 = vmand %vm389_vm11, %vm2155_vm9  ;;  %vm657_vm11 = vcmask 293888  }
 0x2d3   : > { %v402_v30 = vpop.permute.xlu1 %401  ;;  %vm2160_vm0 = vmmov %vm2159_vm14 }
 0x2d4   : > { %512 = vst [vmem:[#allocation3 + $0x18] sm:$0xf0] %v508_v26  ;;  %513 = vst [vmem:[#allocation3 + $0x10] sm:$0xf0] %v509_v27  ;;  %v405_v10 = vsel %vm2158_vm7, %v400_v50, %v402_v30  ;;  %v645_v11 = vld [vmem:[#allocation3 + $0x48] sm:$0xff]  ;;  %vm2163_vm7 = vcmask 924672  }
 0x2d5   : > { %v409_v6 = vsel %vm1915_vm5, %v405_v10, 0.0  ;;  %v646_v37 = vld [vmem:[#allocation3 + $0x28] sm:$0xff]  ;;  %vm2162_vm9 = vmmov %vm2161_vm13 }
 0x2d6   : > { %v648_v32 = vld [vmem:[#allocation3 + $0x20] sm:$0xff]  ;;  %v647_v33 = vld [vmem:[#allocation3 + $0x8] sm:$0xff]  ;;  %411 = vst [vmem:[#allocation3] sm:$0xf] %v409_v6 }
 0x2d7   : > { %691 = vmatprep.subr.mxu0 %v648_v32 }
 0x2d8   : > { %692 = vmatpush1.msra.mxu0 %v647_v33 }
 0x2d9   : > { %693 = vmatprep.subr.mxu0 %v646_v37 }
 0x2da   : > { %694 = vmatpush1.msra.mxu0 %v645_v11 }
 0x2db   : > { %v644_v38 = vld [vmem:[#allocation3 + $0x10] sm:$0xff]  ;;  %v643_v39 = vld [vmem:[#allocation3 + $0x18] sm:$0xff] }
 0x2dc   : > { %695 = vmatprep.subr.mxu0 %v644_v38 }
 0x2dd   : > { %696 = vmatpush1.msra.mxu0 %v643_v39  ;;  %v642_v40 = vld [vmem:[#allocation3] sm:$0xff] }
 0x2de   : > { %697 = vmatprep.subr.mxu0 %v642_v40 }
 0x2df   : > { %698 = vmatpush1.msra.mxu0 %v641_v42 }
 0x2e0   : > { %1156 = vmatmul.mubr.msk.f32.vlgmr.msra.gmra.mxu0 %vm657_vm11, %v640_v41  ;;  %v655_v47 = vpop.permute.xlu1 %654  ;;  %vm2164_vm11 = vmmov %vm2163_vm7 }
 0x336   : > { %v911_v14 = vpop.permute.xlu1 %910  ;;  %v891_v15 = vpop.permute.xlu0 %890 }
 0x33a   : > { %v871_v59 = vpop.permute.xlu1 %870  ;;  %v851_v3 = vpop.permute.xlu0 %850 }
 0x33e   : > { %v801_v17 = vpop.permute.xlu1 %800  ;;  %v821_v5 = vpop.permute.xlu0 %820 }
 0x3a0   : > { %v733_v48 = vpop.f32.mrf.mxu0 }
 0x3a1   : > { %v734_v50 = vadd.f32 %v733_v48, %v655_v47 }
 0x3a2   : > { %v735_v51 = vpop.f32.mrf.mxu0 }
 0x3a3   : > { %v1157_v53 = vmul.f32 -1.442695, %v734_v50  ;;  %v736_v54 = vadd.f32 %v735_v51, %v655_v47 }
 0x3a5   : > { %1279 = vpow2.f32 %v1157_v53  ;;  %v1158_v56 = vmul.f32 -1.442695, %v736_v54 }
 0x3a7   : > { %1281 = vpow2.f32 %v1158_v56 }
 0x3b2   : > { %v1280_v58 = vpop.eup %1279 }
 0x3b3   : > { %v744_v57 = vadd.f32 1.0, %v1280_v58 }
 0x3b4   : > { %v1282_v61 = vpop.eup %1281 }
 0x3b5   : > { %1283 = vrcp.f32 %v744_v57  ;;  %v745_v62 = vadd.f32 1.0, %v1282_v61 }
 0x3b7   : > { %1285 = vrcp.f32 %v745_v62 }
 0x3c2   : > { %v1284_v63 = vpop.eup %1283 }
 0x3c3   : > { %v750_v1 = vmul.f32 %v1284_v63, %v734_v50 }
 0x3c4   : > { %v1286_v2 = vpop.eup %1285 }
 0x3c5   : > { %v751_v4 = vmul.f32 %v1286_v2, %v736_v54  ;;  %906 = vrot.lane.b32.xlu0 %v750_v1, %s1447_s29  ;;  %886 = vrot.lane.b32.xlu1 %v750_v1, %s1446_s23 }
 0x3c9   : > { %866 = vrot.lane.b32.xlu0 %v750_v1, %s1449_s9  ;;  %846 = vrot.lane.b32.xlu1 %v750_v1, %s1448_s8 }
 0x3cd   : > { %822 = vrot.lane.b32.xlu0 %v750_v1, %s1450_s18  ;;  %802 = vrot.lane.b32.xlu1 %v750_v1, %s1452_s13 }
 0x3d1   : > { %888 = vrot.lane.b32.xlu1 %v751_v4, %s1446_s23  ;;  %782 = vrot.lane.b32.xlu0 %v750_v1, %s1451_s19  ;;  %s1456_s23 = smov [#allocation12]  }
 0x3d2   : > { %s1377_s28 = sshll.u32 %s1456_s23, 4  ;;  %s1378_s28 = int_to_ptr.vmem [resolvable:$false] %s1377_s28 }
 0x3d5   : > { %908 = vrot.lane.b32.xlu0 %v751_v4, %s1447_s29  ;;  %762 = vrot.lane.b32.xlu1 %v750_v1, %s1453_s20  ;;  %s1379_s29 = scalar_lea.vmem %s1378_s28, 512 }
 0x3d9   : > { %868 = vrot.lane.b32.xlu0 %v751_v4, %s1449_s9  ;;  %848 = vrot.lane.b32.xlu1 %v751_v4, %s1448_s8 }
 0x3dd   : > { %780 = vrot.lane.b32.xlu0 %v794_v46, %s1451_s19  ;;  %824 = vrot.lane.b32.xlu1 %v751_v4, %s1450_s18  ;;  %s1051_s18 = sshll.u32 %s309_s17, 4  ;;  %s1052_s18 = int_to_ptr.vmem [resolvable:$true] %s1051_s18 }
 0x3de   : > { %s1373_s22 = scalar_lea.vmem %s1052_s18, 256  ;;  %p1380_p4 = scmp.lt.s32.totalorder %s1052_s18, %s1378_s28 }
 0x3df   : > { %p1374_p12 = scmp.ne.s32.totalorder %s1052_s18, %s1373_s22  ;;  %p1381_p5 = scmp.lt.s32.totalorder %s1379_s29, %s1373_s22 }
 0x3e1   : > { %804 = vrot.lane.b32.xlu0 %v751_v4, %s1452_s13  ;;  %784 = vrot.lane.b32.xlu1 %v751_v4, %s1451_s19  ;;  %p1375_p9 = pnand %p1374_p12, %p2182_p2  ;;  %p1382_p6 = por %p1381_p5, %p1380_p4 }
 0x3e3   : > { %p1376_p3 = pneg %p1375_p9 }
 0x3e5   : > { %764 = vrot.lane.b32.xlu0 %v751_v4, %s1453_s20  ;;  %760 = vrot.lane.b32.xlu1 %v794_v46, %s1453_s20  ;;  %s1049_s20 = scalar_lea.hbm %s2045_s7, %s1168_s16  ;;  %p1383_p10 = pnand %p1382_p6, %p1376_p3 }
 0x3e9   : > { %942 = vperm.xlu0 %1274, %v939_v9  }
 0x437   : > { %v887_v18 = vpop.permute.xlu1 %886  ;;  %v907_v20 = vpop.permute.xlu0 %906 }
 0x43b   : > { %v847_v19 = vpop.permute.xlu1 %846  ;;  %v867_v60 = vpop.permute.xlu0 %866 }
 0x43f   : > { %v803_v35 = vpop.permute.xlu1 %802  ;;  %v823_v23 = vpop.permute.xlu0 %822 }
 0x440   : > { %v826_v8 = vsel %vm499_vm6, %v821_v5, %v823_v23 }
 0x443   : > { %v889_v24 = vpop.permute.xlu1 %888  ;;  %v783_v36 = vpop.permute.xlu0 %782 }
 0x444   : > { %v893_v6 = vsel %vm2161_vm13, %v889_v24, %v891_v15  ;;  %v892_v32 = vsel %vm2162_vm9, %v887_v18, %v889_v24  ;;  %vm2173_vm13 = vnez %v2101_v25  ;;  %vm2174_vm9 = vcmask 130048   ;;  %v920_v25 = vld [vmem:[%s2043_s5] sm:$0xff] }
 0x447   : > { %v763_v26 = vpop.permute.xlu1 %762  ;;  %v909_v27 = vpop.permute.xlu0 %908 }
 0x448   : > { %v913_v30 = vsel %vm2159_vm14, %v909_v27, %v911_v14  ;;  %v912_v10 = vsel %vm2160_vm0, %v907_v20, %v909_v27  ;;  %vm2168_vm14 = vnez %v2127_v52 }
 0x449   : > { %1169 = vmatprep.subr.msk.mxu1 %vm1722_vm3, %v913_v30  ;;  %vm2165_vm3 = vcmask 1039360  }
 0x44a   : > { %1170 = vmatpush1.msk.msra.mxu1 %vm1716_vm2, %v912_v10  ;;  %vm2166_vm2 = vmmov %vm2165_vm3 }
 0x44b   : > { %v849_v33 = vpop.permute.xlu1 %848  ;;  %1171 = vmatprep.subr.msk.mxu1 %vm1786_vm4, %v893_v6  ;;  %v869_v37 = vpop.permute.xlu0 %868  ;;  %vm2167_vm4 = vnez %v2132_v55 }
 0x44c   : > { %v872_v11 = vsel %vm2163_vm7, %v867_v60, %v869_v37  ;;  %v873_v38 = vsel %vm2164_vm11, %v869_v37, %v871_v59  ;;  %1172 = vmatpush1.msk.msra.mxu1 %vm1778_vm15, %v892_v32  ;;  %v853_v12 = vsel %vm2165_vm3, %v849_v33, %v851_v3  ;;  %v852_v13 = vsel %vm2166_vm2, %v847_v19, %v849_v33 }
 0x44d   : > { %1173 = vmatprep.subr.msk.mxu1 %vm1869_vm8, %v873_v38  ;;  %vm2169_vm15 = vnez %v2091_v44  ;;  %vm2170_vm8 = vnez %v2089_v43  ;;  %vm2175_vm7 = vnez %v2103_v28  ;;  %vm2178_vm11 = vcmask 138240  }
 0x44e   : > { %1174 = vmatpush1.msk.msra.mxu1 %vm1857_vm12, %v872_v11  ;;  %vm2171_vm12 = vcmask 121856   ;;  %vm2180_vm3 = vnez %v2097_v16  ;;  %vm945_vm2 = vcmask 588800  }
 0x44f   : > { %v825_v34 = vpop.permute.xlu1 %824  ;;  %1175 = vmatprep.subr.msk.mxu1 %vm2167_vm4, %v853_v12  ;;  %v781_v39 = vpop.permute.xlu0 %780  ;;  %vm2172_vm0 = vmmov %vm2171_vm12  ;;  %vm2181_vm4 = vnez %v2123_v49 }
 0x450   : > { %1176 = vmatpush1.msk.msra.mxu1 %vm2168_vm14, %v852_v13  ;;  %v827_v31 = vsel %vm499_vm6, %v823_v23, %v825_v34  ;;  %v806_v44 = vsel %vm2172_vm0, %v801_v17, %v803_v35  ;;  %vm2176_vm6 = vmmov %vm2174_vm9 }
 0x451   : > { %1177 = vmatprep.subr.msk.mxu1 %vm2169_vm15, %v751_v4  ;;  %v786_v52 = vsel %vm2176_vm6, %v781_v39, %v783_v36 }
 0x452   : > { %1178 = vmatpush1.msk.msra.mxu1 %vm2170_vm8, %v750_v1 }
 0x453   : > { %v785_v7 = vpop.permute.xlu1 %784  ;;  %1179 = vmatprep.subr.msk.mxu1 %vm1897_vm1, %v827_v31  ;;  %v805_v55 = vpop.permute.xlu0 %804  ;;  %vm2177_vm1 = vnez %v2099_v22 }
 0x454   : > { %v807_v40 = vsel %vm2171_vm12, %v803_v35, %v805_v55  ;;  %1180 = vmatpush1.msk.msra.mxu1 %vm1891_vm10, %v826_v8  ;;  %v787_v43 = vsel %vm2174_vm9, %v783_v36, %v785_v7  ;;  %vm2179_vm10 = vmmov %vm2178_vm11 }
 0x455   : > { %1181 = vmatprep.subr.msk.mxu1 %vm2173_vm13, %v807_v40 }
 0x456   : > { %1182 = vmatpush1.msk.msra.mxu1 %vm2175_vm7, %v806_v44 }
 0x457   : > { %v761_v0 = vpop.permute.xlu1 %760  ;;  %1183 = vmatprep.subr.msk.mxu1 %vm2177_vm1, %v787_v43  ;;  %v765_v41 = vpop.permute.xlu0 %764 }
 0x458   : > { %v766_v21 = vsel %vm2178_vm11, %v761_v0, %v763_v26  ;;  %v767_v42 = vsel %vm2179_vm10, %v763_v26, %v765_v41  ;;  %1184 = vmatpush1.msk.msra.mxu1 %vm2180_vm3, %v786_v52 }
 0x459   : > { %1185 = vmatprep.subr.msk.mxu1 %vm1915_vm5, %v767_v42 }
 0x45a   : > { %1186 = vmatpush1.msk.msra.mxu1 %vm2181_vm4, %v766_v21 }
 0x45b   : > { %1159 = vmatmul.mubr.msk.f32.vlgmr.msra.gmra.mxu1 %vm945_vm2, %v920_v25 }
 0x464   : > { %v943_v22 = vpop.permute.xlu0 %942 }
 0x51b   : > { %v1015_v28 = vpop.f32.mrf.mxu1 }
 0x51c   : > { %v1016_v45 = vadd.f32 %v1015_v28, %v943_v22 }
 0x51d   : > { %v1017_v46 = vpop.f32.mrf.mxu1 }
 0x51e   : > { %v1160_v16 = vmul.f32 -1.442695, %v1016_v45  ;;  %v1018_v47 = vadd.f32 %v1017_v46, %v943_v22 }
 0x520   : > { %1287 = vpow2.f32 %v1160_v16  ;;  %v1161_v48 = vmul.f32 -1.442695, %v1018_v47 }
 0x522   : > { %1289 = vpow2.f32 %v1161_v48 }
 0x52d   : > { %v1288_v50 = vpop.eup %1287 }
 0x52e   : > { %v1026_v51 = vadd.f32 1.0, %v1288_v50 }
 0x52f   : > { %v1290_v53 = vpop.eup %1289 }
 0x530   : > { %1291 = vrcp.f32 %v1026_v51  ;;  %v1027_v29 = vadd.f32 1.0, %v1290_v53 }
 0x532   : > { %1293 = vrcp.f32 %v1027_v29 }
 0x53d   : > { %v1292_v49 = vpop.eup %1291 }
 0x53e   : > { %v1032_v54 = vmul.f32 %v1292_v49, %v1016_v45 }
 0x53f   : > { %v1294_v56 = vpop.eup %1293 }
 0x540   : > { %1034 = vst [vmem:[%s309_s17] sm:$0xff] %v1032_v54  ;;  %v1033_v58 = vmul.f32 %v1294_v56, %v1018_v47 }
 0x542   : > { %1035 = vst [vmem:[%s309_s17 + $0x8] sm:$0xff] %v1033_v58 }
 0x543   : > { %1386 = shalt.err (!%p1383_p10)
}
 0x544   : > { %s1387_s8 = scalar_lea.hbm %s1049_s20, 256  ;;  %s1391_s15 = scalar_lea.hbm %s2045_s7, 512 }
 0x545   : > { %p1388_p7 = scmp.ne.s32.totalorder %s1049_s20, %s1387_s8  ;;  %p1392_p11 = scmp.lt.s32.totalorder %s1049_s20, %s2045_s7 }
 0x546   : > { %p1393_p0 = scmp.lt.s32.totalorder %s1391_s15, %s1387_s8 }
 0x547   : > { %p1389_p8 = pnand %p1388_p7, %p2182_p2 }
 0x548   : > { %p1394_p1 = por %p1393_p0, %p1392_p11 }
 0x549   : > { %p1390_p13 = pneg %p1389_p8 }
 0x54b   : > { %p1395_p12 = pnand %p1394_p1, %p1390_p13 }
 0x54d   : > { %1398 = shalt.err (!%p1395_p12)
}
 0x54e   : > { %1205 = dma.vmem_to_hbm [thread:$0]  (%p2182_p2), %s1052_s18, 256, %s1049_s20, %s1037_s21  }
 0x54f PF: > { %p1227_p9 = scmp.ge.s32.totalorder %s1441_s27, 2  ;;  %s1063_s19 = sand.u32 1, %s1429_s24  }
 0x550   : > { %p2183_p3 = scmp.ne.s32.totalorder %s2080_s12, 0  ;;  %s1064_s13 = scalar_lea.sflag [#allocation8], %s1063_s19 }
 0x552   : > { %p1218_p4 = pnand %p1227_p9, %p2183_p3 }
 0x554   : > { %p1219_p5 = pneg %p1218_p4 }
 0x556   : > { %1424 = dma.done.wait (%p1219_p5), %s1064_s13, 256  }
 0x557   : > { %1426 = vsyncadd (%p1219_p5), %s1064_s13, 4294967040  ;;  %p19_p6 = scmp.ge.s32.totalorder %s1522_s30, 4   ;;  %s2184_s24 = smov %s1433_s25 }
 0x558   : > { %s2185_s25 = smov %s1437_s26  ;;  %s2186_s26 = smov %s1533_s10 }
 0x559   : > { %s2187_s27 = smov %s1522_s30  ;;  %21 = sbr.rel (!%p19_p6) target bundleno = 5 (0x5), region = 96 }
 0x55e   :  { %1069 = vsyncpa [#allocation7], 1 }
 0x55f   :  { %1071 = vsyncpa [#allocation7 + $0x1], 1 }
 0x560   :  { %1072 = vsyncpa [#allocation10], 1 }
 0x561   :  { %1073 = vsyncpa [#allocation8], 1 }
 0x562   :  { %1075 = vsyncpa [#allocation8 + $0x1], 1 }

</bundles_post_ra>
